<compile_context>
chip_gen: v6e
topology: v6e:2x2x1
jax: 0.10.0
libtpu: 0.0.40
codegen_flags: <defaults>
</compile_context>

<pallas_src>
import functools

import jax
import jax.numpy as jnp
from jax.experimental import pallas as pl
from jax.experimental.pallas import tpu as pltpu

LEAKY_SLOPE = 0.01     # torch.nn.LeakyReLU default
BN_EPS = 1e-5          # torch.nn.BatchNorm3d default
ACT_DTYPE = jnp.bfloat16   # activation storage dtype (f32 accumulation inside)


def _round_up(x, m):
    return (x + m - 1) // m * m


def _vmem_caps():
    """(vmem_limit_bytes for CompilerParams, per-call tile budget)."""
    cap = 64 << 20
    try:
        info = pltpu.get_tpu_info()
        cap = int(getattr(info, "vmem_capacity_bytes", cap)) or cap
    except Exception:
        pass
    limit = min((cap * 3) // 4, 96 << 20)          # ~48 MiB on v7x, 96 on v5e/v6e
    budget = (12 << 20) if cap <= (64 << 20) else (24 << 20)
    return limit, budget


# ----------------------------------------------------------------------------
# Pallas kernel 1: tiled matmul + bias + LeakyReLU (+ per-block BN partials)
# Used by the ConvTranspose3d lowering, the final 1x1x1 conv and as a fallback.
# ----------------------------------------------------------------------------
def _mm_kernel(x_ref, w_ref, b_ref, o_ref, *rest, resident_w, tk,
               apply_leaky, has_stats):
    st_ref = rest[0] if has_stats else None
    acc_ref = rest[-1]
    k = pl.program_id(1)

    @pl.when(k == 0)
    def _init():
        acc_ref[...] = jnp.zeros_like(acc_ref)

    if resident_w:
        off = pl.multiple_of(k * tk, tk)
        w_blk = w_ref[pl.ds(off, tk), :]
    else:
        w_blk = w_ref[...]
    acc_ref[...] += jnp.dot(x_ref[...], w_blk,
                            preferred_element_type=jnp.float32)

    @pl.when(k == pl.num_programs(1) - 1)
    def _finalize():
        y = acc_ref[...] + b_ref[...]
        if apply_leaky:
            y = jnp.where(y >= 0, y, LEAKY_SLOPE * y)
        o_ref[...] = y.astype(o_ref.dtype)
        if has_stats:
            st_ref[...] = jnp.concatenate(
                [jnp.sum(y, axis=0, keepdims=True),
                 jnp.sum(y * y, axis=0, keepdims=True)], axis=0)


def _pick_mm_tiles(m8, K, Nout, esize, sub, budget):
    tk = K if K <= 512 else 512
    k_pad = _round_up(K, tk)
    resident_w = k_pad * Nout * esize <= min(budget // 3, 6 << 20)
    cap_tm = 1024 if budget >= (20 << 20) else 512
    tm = _round_up(min(cap_tm, m8), sub)

    def footprint(tm_, tk_, kp_):
        w_bytes = 2 * (kp_ if resident_w else tk_) * Nout * esize
        return (2 * tm_ * tk_ * esize + w_bytes + 2 * tm_ * Nout * esize
                + 4 * (tm_ * Nout + 8 * Nout))

    while footprint(tm, tk, k_pad) > budget and tm > 2 * sub:
        tm = _round_up(tm // 2, sub)
    while footprint(tm, tk, k_pad) > budget and tk > 128:
        tk = max(128, (tk // 2 // 128) * 128)
        k_pad = _round_up(K, tk)
    return tm, tk, k_pad, resident_w


def matmul_bias_act(x2d, w2d, bias, *, apply_leaky, want_stats,
                    act_dtype=ACT_DTYPE, out_dtype=None):
    """y = leaky(x2d @ w2d + bias); optional per-channel (biased) batch stats."""
    M, K = x2d.shape
    Nout = w2d.shape[1]
    out_dtype = act_dtype if out_dtype is None else out_dtype
    limit, budget = _vmem_caps()
    esize = jnp.dtype(act_dtype).itemsize
    sub = 16 if esize < 4 else 8
    m8 = _round_up(M, sub)
    tm, tk, k_pad, resident_w = _pick_mm_tiles(m8, K, Nout, esize, sub, budget)
    m_pad = _round_up(M, tm)
    if m_pad // tm < 2 and m8 >= 2 * sub:      # keep both v7x TensorCores busy
        tm = _round_up((m8 + 1) // 2, sub)
        m_pad = _round_up(M, tm)
    mb, kb = m_pad // tm, k_pad // tk

    x2d = x2d.astype(act_dtype)
    w2d = w2d.astype(act_dtype)
    if m_pad > M or k_pad > K:
        x2d = jnp.pad(x2d, ((0, m_pad - M), (0, k_pad - K)))
    if k_pad > K:
        w2d = jnp.pad(w2d, ((0, k_pad - K), (0, 0)))
    bias_f32 = bias.reshape(1, Nout).astype(jnp.float32)

    kernel = functools.partial(_mm_kernel, resident_w=resident_w, tk=tk,
                               apply_leaky=apply_leaky, has_stats=want_stats)
    w_spec = (pl.BlockSpec((k_pad, Nout), lambda i, j: (0, 0)) if resident_w
              else pl.BlockSpec((tk, Nout), lambda i, j: (j, 0)))
    out_shape = [jax.ShapeDtypeStruct((m_pad, Nout), out_dtype)]
    out_specs = [pl.BlockSpec((tm, Nout), lambda i, j: (i, 0))]
    if want_stats:
        out_shape.append(jax.ShapeDtypeStruct((mb, 2, Nout), jnp.float32))
        out_specs.append(pl.BlockSpec((None, 2, Nout), lambda i, j: (i, 0, 0)))
    cost = pl.CostEstimate(
        flops=2 * m_pad * k_pad * Nout, transcendentals=0,
        bytes_accessed=(m_pad * k_pad + k_pad * Nout) * esize
        + m_pad * Nout * jnp.dtype(out_dtype).itemsize)

    res = pl.pallas_call(
        kernel,
        out_shape=tuple(out_shape),
        grid=(mb, kb),
        in_specs=[pl.BlockSpec((tm, tk), lambda i, j: (i, j)),
                  w_spec,
                  pl.BlockSpec((1, Nout), lambda i, j: (0, 0))],
        out_specs=tuple(out_specs),
        scratch_shapes=[pltpu.VMEM((tm, Nout), jnp.float32)],
        compiler_params=pltpu.CompilerParams(
            dimension_semantics=("parallel", "arbitrary"),
            vmem_limit_bytes=limit),
        cost_estimate=cost,
    )(x2d, w2d, bias_f32)

    y = res[0][:M] if m_pad > M else res[0]
    if not want_stats:
        return y, None, None

    st = res[1]
    total = jnp.sum(st[:, 0, :], axis=0)
    total_sq = jnp.sum(st[:, 1, :], axis=0)
    n_pad = m_pad - M
    if n_pad:
        pv = bias.astype(jnp.float32)      # padded rows produced leaky(bias)
        if apply_leaky:
            pv = jnp.where(pv >= 0, pv, LEAKY_SLOPE * pv)
        total = total - n_pad * pv
        total_sq = total_sq - n_pad * pv * pv
    mean = total / M
    var = jnp.maximum(total_sq / M - mean * mean, 0.0)   # biased var (torch)
    return y, mean, var


# ----------------------------------------------------------------------------
# Pallas kernel 2: fused Conv3d(k=4, s=2, p=1) + bias + LeakyReLU + BN partials
# Input patches are built on-chip from main/halo windows of the padded input;
# no im2col is ever written to HBM.
# ----------------------------------------------------------------------------
def _fused_conv_kernel(x_mm, x_mh, x_hm, x_hh, w_ref, b_ref, o_ref, *rest,
                       T_d, T_h, Wo, apply_leaky, has_stats):
    st_ref = rest[0] if has_stats else None
    w = w_ref[...]                       # [64*Cin, Cout], resident
    b = b_ref[...]                       # [1, Cout] f32
    if has_stats:
        ssum = jnp.zeros_like(b)
        ssq = jnp.zeros_like(b)
    for td in range(T_d):
        for th in range(T_h):
            parts = []
            for kd in range(4):
                dl = 2 * td + kd
                for kh in range(4):
                    hl = 2 * th + kh
                    if dl < 2 * T_d:
                        src = x_mm if hl < 2 * T_h else x_mh
                        di = dl
                    else:
                        src = x_hm if hl < 2 * T_h else x_hh
                        di = dl - 2 * T_d
                    hi = hl if hl < 2 * T_h else hl - 2 * T_h
                    row = src[di, hi]                      # [Wo+1, 2*Cin]
                    parts.append(row[0:Wo, :])             # sw = 0
                    parts.append(row[1:Wo + 1, :])         # sw = 1
            patch = jnp.concatenate(parts, axis=1)         # [Wo, 64*Cin]
            y = jnp.dot(patch, w, preferred_element_type=jnp.float32) + b
            if apply_leaky:
                y = jnp.where(y >= 0, y, LEAKY_SLOPE * y)
            o_ref[td, th] = y.astype(o_ref.dtype)
            if has_stats:
                ssum = ssum + jnp.sum(y, axis=0, keepdims=True)
                ssq = ssq + jnp.sum(y * y, axis=0, keepdims=True)
    if has_stats:
        st_ref[...] = jnp.concatenate([ssum, ssq], axis=0)


def _pick_conv_tiles(Do, Ho, Wo, cin2, esize, budget=4 << 20):
    def divpow2(x, cap):
        t = 1
        while t * 2 <= cap and x % (t * 2) == 0:
            t *= 2
        return t

    td = divpow2(Do, 2)
    th = divpow2(Ho, 8)

    def in_bytes(a, b):
        return (2 * a + 2) * (2 * b + 2) * (Wo + 1) * cin2 * esize

    while th > 1 and in_bytes(td, th) > budget:
        th //= 2
    while td > 1 and in_bytes(td, th) > budget:
        td //= 2
    return td, th


def _conv3d_down_fused(x, w_pt, b, *, affine, apply_leaky, want_stats,
                       act_dtype):
    """x: [N,D,H,W,Cin] raw; the pending BN affine of x is applied in the pad
    copy (exact: padding zeros stay zeros of the *normalized* activation)."""
    Cout, Cin = w_pt.shape[0], w_pt.shape[1]
    N, D, H, W, _ = x.shape
    Do, Ho, Wo = D // 2, H // 2, W // 2

    xa = _apply_affine(x, affine).astype(act_dtype)
    xp = jnp.pad(xa, ((0, 0), (1, 1), (1, 1), (1, 1), (0, 0)))
    # Fold the W-axis tap parity into channels (pure reshape, no copy):
    # xq[n,d,h,ww, rw*Cin+c] = xp[n,d,h, 2*ww+rw, c]
    xq = xp.reshape(N, D + 2, H + 2, Wo + 1, 2 * Cin)
    K = 64 * Cin
    w2d = jnp.transpose(w_pt, (2, 3, 4, 1, 0)).reshape(K, Cout).astype(act_dtype)
    b2d = b.reshape(1, Cout).astype(jnp.float32)

    limit, _ = _vmem_caps()
    esize = jnp.dtype(act_dtype).itemsize
    T_d, T_h = _pick_conv_tiles(Do, Ho, Wo, 2 * Cin, esize)
    grid = (N, Do // T_d, Ho // T_h)

    in_specs = [
        pl.BlockSpec((None, 2 * T_d, 2 * T_h, Wo + 1, 2 * Cin),
                     lambda n, i, j: (n, i, j, 0, 0)),
        pl.BlockSpec((None, 2 * T_d, 2, Wo + 1, 2 * Cin),
                     lambda n, i, j: (n, i, T_h * (j + 1), 0, 0)),
        pl.BlockSpec((None, 2, 2 * T_h, Wo + 1, 2 * Cin),
                     lambda n, i, j: (n, T_d * (i + 1), j, 0, 0)),
        pl.BlockSpec((None, 2, 2, Wo + 1, 2 * Cin),
                     lambda n, i, j: (n, T_d * (i + 1), T_h * (j + 1), 0, 0)),
        pl.BlockSpec((K, Cout), lambda n, i, j: (0, 0)),       # resident weight
        pl.BlockSpec((1, Cout), lambda n, i, j: (0, 0)),       # resident bias
    ]
    out_shape = [jax.ShapeDtypeStruct((N, Do, Ho, Wo, Cout), act_dtype)]
    out_specs = [pl.BlockSpec((None, T_d, T_h, Wo, Cout),
                              lambda n, i, j: (n, i, j, 0, 0))]
    if want_stats:
        out_shape.append(jax.ShapeDtypeStruct(
            (N, Do // T_d, Ho // T_h, 2, Cout), jnp.float32))
        out_specs.append(pl.BlockSpec((None, None, None, 2, Cout),
                                      lambda n, i, j: (n, i, j, 0, 0)))

    kernel = functools.partial(_fused_conv_kernel, T_d=T_d, T_h=T_h, Wo=Wo,
                               apply_leaky=apply_leaky, has_stats=want_stats)
    n_out = N * Do * Ho * Wo
    cost = pl.CostEstimate(
        flops=2 * n_out * K * Cout, transcendentals=0,
        bytes_accessed=int(2.5 * N * (D + 2) * (H + 2) * (W + 2) * Cin * esize
                           + K * Cout * esize + n_out * Cout * esize))

    res = pl.pallas_call(
        kernel,
        out_shape=tuple(out_shape),
        grid=grid,
        in_specs=in_specs,
        out_specs=tuple(out_specs),
        compiler_params=pltpu.CompilerParams(
            dimension_semantics=("parallel", "parallel", "parallel"),
            vmem_limit_bytes=limit),
        cost_estimate=cost,
    )(xq, xq, xq, xq, w2d, b2d)

    y = res[0]
    if not want_stats:
        return y, None, None
    st = res[1]
    total = jnp.sum(st[..., 0, :], axis=(0, 1, 2))
    total_sq = jnp.sum(st[..., 1, :], axis=(0, 1, 2))
    mean = total / n_out
    var = jnp.maximum(total_sq / n_out - mean * mean, 0.0)
    return y, mean, var


# ----------------------------------------------------------------------------
# im2col (XLA glue) -- kept for the ConvTranspose3d lowering and as fallback.
# ----------------------------------------------------------------------------
def _im2col_3d(x, k, stride, pad):
    N, D, H, W, C = x.shape
    if pad:
        x = jnp.pad(x, ((0, 0), (pad, pad), (pad, pad), (pad, pad), (0, 0)))
    Dp, Hp, Wp = D + 2 * pad, H + 2 * pad, W + 2 * pad
    Do = (Dp - k) // stride + 1
    Ho = (Hp - k) // stride + 1
    Wo = (Wp - k) // stride + 1
    cols = []
    for kd in range(k):
        for kh in range(k):
            for kw in range(k):
                cols.append(x[:, kd:kd + stride * (Do - 1) + 1:stride,
                              kh:kh + stride * (Ho - 1) + 1:stride,
                              kw:kw + stride * (Wo - 1) + 1:stride, :])
    cols = jnp.stack(cols, axis=4)
    cols = cols.reshape(N * Do * Ho * Wo, k * k * k * C)
    return cols, (N, Do, Ho, Wo)


def conv3d_block(x, w_pt, b, *, affine=None, apply_leaky=True, want_stats=True,
                 act_dtype=ACT_DTYPE):
    """Down-path Conv3d(k=4, s=2, p=1). Fused Pallas path for even spatial dims;
    im2col fallback otherwise."""
    Cout, Cin, k = w_pt.shape[0], w_pt.shape[1], w_pt.shape[2]
    N, D, H, W, _ = x.shape
    if k == 4 and D % 2 == 0 and H % 2 == 0 and W % 2 == 0 and min(D, H, W) >= 2:
        return _conv3d_down_fused(x, w_pt, b, affine=affine,
                                  apply_leaky=apply_leaky,
                                  want_stats=want_stats, act_dtype=act_dtype)
    xa = _apply_affine(x, affine).astype(act_dtype)
    cols, (N, Do, Ho, Wo) = _im2col_3d(xa, k, 2, 1)
    w2d = jnp.transpose(w_pt, (2, 3, 4, 1, 0)).reshape(k * k * k * Cin, Cout)
    y, mean, var = matmul_bias_act(cols, w2d, b, apply_leaky=apply_leaky,
                                   want_stats=want_stats, act_dtype=act_dtype)
    return y.reshape(N, Do, Ho, Wo, Cout), mean, var


def conv_transpose3d_fused(x, w_pt, b, *, act_dtype=ACT_DTYPE):
    """ConvTranspose3d(k=4, s=2, p=1) + LeakyReLU via sub-pixel phases:
    out[2m+r] = sum_s xpad[m+r+s] * W[3-2s-r] (per dim); all 8 phases share
    ONE k=2/s=1 im2col and one matmul against an [8*Cin, 8*Cout] weight."""
    Cin, Cout = w_pt.shape[0], w_pt.shape[1]
    assert w_pt.shape[2:] == (4, 4, 4)
    x = x.astype(act_dtype)
    N, D, H, W, _ = x.shape
    xp = jnp.pad(x, ((0, 0), (1, 1), (1, 1), (1, 1), (0, 0)))
    cols, _ = _im2col_3d(xp, 2, 1, 0)                    # windows (D+1,H+1,W+1)

    row_blocks = []
    for sd in (0, 1):
        for sh in (0, 1):
            for sw in (0, 1):
                phase_cols = []
                for rd in (0, 1):
                    for rh in (0, 1):
                        for rw in (0, 1):
                            phase_cols.append(
                                w_pt[:, :, 3 - 2 * sd - rd,
                                     3 - 2 * sh - rh, 3 - 2 * sw - rw])
                row_blocks.append(jnp.concatenate(phase_cols, axis=1))
    wc = jnp.concatenate(row_blocks, axis=0)              # [8*Cin, 8*Cout]
    bc = jnp.tile(b, 8)

    y2d, _, _ = matmul_bias_act(cols, wc, bc, apply_leaky=True,
                                want_stats=False, act_dtype=act_dtype)
    Y = y2d.reshape(N, D + 1, H + 1, W + 1, 2, 2, 2, Cout)
    slabs = []
    for rd in (0, 1):
        for rh in (0, 1):
            for rw in (0, 1):
                slabs.append(Y[:, rd:rd + D, rh:rh + H, rw:rw + W,
                               rd, rh, rw, :])
    ph = jnp.stack(slabs, axis=0).reshape(2, 2, 2, N, D, H, W, Cout)
    out = ph.transpose(3, 4, 0, 5, 1, 6, 2, 7).reshape(
        N, 2 * D, 2 * H, 2 * W, Cout)
    return out


# ----------------------------------------------------------------------------
# Lazy BatchNorm bookkeeping (per-channel affines; no extra activation passes)
# ----------------------------------------------------------------------------
def _apply_affine(x, aff):
    if aff is None:
        return x
    s, t = aff
    return x.astype(jnp.float32) * s + t


def _bn_affine(gamma, beta, mean, var):
    s = gamma * jax.lax.rsqrt(var + BN_EPS)
    return s, beta - mean * s


def _channel_stats(x):
    xf = x.astype(jnp.float32)
    m = jnp.mean(xf, axis=(0, 1, 2, 3))
    v = jnp.maximum(jnp.mean(xf * xf, axis=(0, 1, 2, 3)) - m * m, 0.0)
    return m, v


# ----------------------------------------------------------------------------
# Net3D parameters + forward
# ----------------------------------------------------------------------------
def init_net3d_params(key, in_channel, pred_dim, chans):
    down_in = [in_channel, chans, 2 * chans]
    down_out = [chans, 2 * chans, 4 * chans]
    up_in = [4 * chans, 6 * chans]
    up_bn = [6 * chans, 3 * chans]
    up_out = [4 * chans, 2 * chans]
    keys = list(jax.random.split(key, 16))
    params = {"down": [], "up": []}
    for cin, cout in zip(down_in, down_out):
        w = 0.1 * jax.random.normal(keys.pop(), (cout, cin, 4, 4, 4), jnp.float32)
        b = 0.1 * jax.random.normal(keys.pop(), (cout,), jnp.float32)
        params["down"].append((w, b, jnp.ones((cout,), jnp.float32),
                               jnp.zeros((cout,), jnp.float32)))
    for cin, cbn, cout in zip(up_in, up_bn, up_out):
        w = 0.1 * jax.random.normal(keys.pop(), (cin, cout, 4, 4, 4), jnp.float32)
        b = 0.1 * jax.random.normal(keys.pop(), (cout,), jnp.float32)
        params["up"].append((w, b, jnp.ones((cbn,), jnp.float32),
                             jnp.zeros((cbn,), jnp.float32)))
    wf = 0.1 * jax.random.normal(keys.pop(), (pred_dim, 3 * chans, 1, 1, 1),
                                 jnp.float32)
    bf = 0.1 * jax.random.normal(keys.pop(), (pred_dim,), jnp.float32)
    params["final"] = (wf, bf)
    return params


def net3d_forward(params, x_ncdhw, do_bn=True, act_dtype=ACT_DTYPE):
    """x_ncdhw: [N, C, D, H, W] -> [N, pred_dim, D/2, H/2, W/2] (float32)."""
    feat = jnp.transpose(x_ncdhw, (0, 2, 3, 4, 1)).astype(jnp.float32)  # NDHWC
    aff = None        # pending per-channel BN affine of the current tensor
    skips = []        # (raw activation, its pending BN affine, raw mean, var)

    # Down path: fused Conv3d(k4,s2,p1) + LeakyReLU + BN partial stats.
    for (w, b, gamma, beta) in params["down"]:
        feat, mean, var = conv3d_block(feat, w, b, affine=aff,
                                       apply_leaky=True, want_stats=do_bn,
                                       act_dtype=act_dtype)
        aff = _bn_affine(gamma, beta, mean, var) if do_bn else None
        skips.append((feat, aff, mean, var))
    skips.pop()

    # Up path: ConvTranspose3d(k4,s2,p1) + LeakyReLU fused; skip concat kept
    # "virtual" until a transposed conv actually needs the materialized tensor.
    cur, cur_skip = feat, None
    for (w, b, gamma, beta) in params["up"]:
        if cur_skip is None:
            x_in = _apply_affine(cur, aff)
        else:
            x_in = _apply_affine(
                jnp.concatenate([cur, cur_skip.astype(cur.dtype)], axis=-1), aff)
        up = conv_transpose3d_fused(x_in, w, b, act_dtype=act_dtype)
        skip_raw, skip_aff, skip_mean, skip_var = skips.pop()
        c1 = up.shape[-1]
        if do_bn:
            mean_u, var_u = _channel_stats(up)
            if skip_aff is not None:
                s_sk, t_sk = skip_aff
                mean_sk = s_sk * skip_mean + t_sk
                var_sk = s_sk * s_sk * skip_var
            else:
                mean_sk, var_sk = skip_mean, skip_var
            s_bn, t_bn = _bn_affine(gamma, beta,
                                    jnp.concatenate([mean_u, mean_sk]),
                                    jnp.concatenate([var_u, var_sk]))
            if skip_aff is not None:
                s2 = s_bn[c1:] * s_sk
                t2 = s_bn[c1:] * t_sk + t_bn[c1:]
            else:
                s2, t2 = s_bn[c1:], t_bn[c1:]
            aff = (jnp.concatenate([s_bn[:c1], s2]),
                   jnp.concatenate([t_bn[:c1], t2]))
        else:
            if skip_aff is None:
                aff = None
            else:
                s_sk, t_sk = skip_aff
                aff = (jnp.concatenate([jnp.ones((c1,), jnp.float32), s_sk]),
                       jnp.concatenate([jnp.zeros((c1,), jnp.float32), t_sk]))
        cur, cur_skip = up, skip_raw

    # Final 1x1x1 conv: pending BN affine folds exactly into the weight halves,
    # so the largest concat is never materialized (two matmuls + add).
    wf, bf = params["final"]
    P = wf.shape[0]
    N, D, H, W, c_up = cur.shape
    c_sk = 0 if cur_skip is None else cur_skip.shape[-1]
    w2d = wf.reshape(P, c_up + c_sk).T                     # [C, P]
    b_eff = bf.astype(jnp.float32)
    if aff is not None:
        s, t = aff
        b_eff = b_eff + t @ w2d
        w2d = w2d * s[:, None]
    M = N * D * H * W
    out, _, _ = matmul_bias_act(cur.reshape(M, c_up), w2d[:c_up], b_eff,
                                apply_leaky=False, want_stats=False,
                                act_dtype=act_dtype, out_dtype=jnp.float32)
    if cur_skip is not None:
        out2, _, _ = matmul_bias_act(cur_skip.reshape(M, c_sk), w2d[c_up:],
                                     jnp.zeros((P,), jnp.float32),
                                     apply_leaky=False, want_stats=False,
                                     act_dtype=act_dtype, out_dtype=jnp.float32)
        out = out + out2
    out = out.reshape(N, D, H, W, P).astype(jnp.float32)
    return jnp.transpose(out, (0, 4, 1, 2, 3))             # -> NCDHW


if __name__ == "__main__":
    key = jax.random.PRNGKey(0)
    kp, kx, k1, k2, k3, k4, k5 = jax.random.split(key, 7)

    # 1) Fused matmul/bias/LeakyReLU/stats kernel (exercises K-tiling, resident
    #    weight, padded-row stats correction and the mb>=2 split).
    xt = jax.random.normal(k1, (300, 640), jnp.float32)
    wt = jax.random.normal(k2, (640, 24), jnp.float32)
    bt = jax.random.normal(k3, (24,), jnp.float32)
    yt, mt, _ = matmul_bias_act(xt, wt, bt, apply_leaky=True, want_stats=True,
                                act_dtype=jnp.float32)
    ref = xt @ wt + bt
    ref = jnp.where(ref >= 0, ref, LEAKY_SLOPE * ref)
    assert jnp.allclose(yt, ref, rtol=2e-2, atol=5e-1), "matmul kernel mismatch"
    assert jnp.allclose(mt, ref.mean(axis=0), rtol=2e-2, atol=5e-1)

    # 2) Fused Conv3d(k4,s2,p1) kernel vs. lax.conv_general_dilated (f32).
    xc = jax.random.normal(k4, (2, 8, 8, 8, 4), jnp.float32)
    wc = 0.1 * jax.random.normal(k5, (8, 4, 4, 4, 4), jnp.float32)
    bc = 0.1 * jax.random.normal(k1, (8,), jnp.float32)
    yc, mc, vc = conv3d_block(xc, wc, bc, affine=None, apply_leaky=True,
                              want_stats=True, act_dtype=jnp.float32)
    ref_c = jax.lax.conv_general_dilated(
        xc, jnp.transpose(wc, (2, 3, 4, 1, 0)), window_strides=(2, 2, 2),
        padding=((1, 1), (1, 1), (1, 1)),
        dimension_numbers=("NDHWC", "DHWIO", "NDHWC")) + bc
    ref_c = jnp.where(ref_c >= 0, ref_c, LEAKY_SLOPE * ref_c)
    assert jnp.allclose(yc, ref_c, rtol=2e-2, atol=2e-1), "conv kernel mismatch"
    assert jnp.allclose(mc, ref_c.mean(axis=(0, 1, 2, 3)), rtol=2e-2, atol=1e-1)

    # 3) Full Net3D forward (bf16 activations, do_bn=True).
    in_channel, pred_dim, chans = 4, 8, 8
    N, S = 2, 16
    params = init_net3d_params(kp, in_channel, pred_dim, chans)
    x = jax.random.normal(kx, (N, in_channel, S, S, S), jnp.float32)
    fwd = jax.jit(functools.partial(net3d_forward, do_bn=True))
    out = jax.block_until_ready(fwd(params, x))
    assert out.shape == (N, pred_dim, S // 2, S // 2, S // 2), out.shape
    assert bool(jnp.all(jnp.isfinite(out)))
    print("KERNEL_OK")
</pallas_src>

<mosaic_0001>
module attributes {stable_mosaic.version = 11 : i64} {
  func.func @_mm_kernel(%arg0: i32, %arg1: i32, %arg2: memref<152x512xf32, #tpu.memory_space<vmem>>, %arg3: memref<1024x24xf32, #tpu.memory_space<vmem>>, %arg4: memref<1x24xf32, #tpu.memory_space<vmem>>, %arg5: memref<152x24xf32, #tpu.memory_space<vmem>>, %arg6: memref<1x2x24xf32, #tpu.memory_space<vmem>>, %arg7: memref<152x24xf32, #tpu.memory_space<vmem>>) attributes {dimension_semantics = [#tpu.dimension_semantics<parallel>, #tpu.dimension_semantics<arbitrary>], iteration_bounds = array<i64: 2, 2>, scalar_prefetch = 0 : i64, scratch_operands = 1 : i64, tpu.core_type = #tpu.core_type<tc>, window_params = [{transform_indices = @transform_0, window_bounds = array<i64: 152, 512>}, {pipeline_mode = #tpu.pipeline_mode<synchronous>, transform_indices = @transform_1, window_bounds = array<i64: 1024, 24>}, {pipeline_mode = #tpu.pipeline_mode<synchronous>, transform_indices = @transform_2, window_bounds = array<i64: 1, 24>}, {transform_indices = @transform_3, window_bounds = array<i64: 152, 24>}, {transform_indices = @transform_4, window_bounds = array<i64: 1, 2, 24>}]} {
    %c0_i32 = arith.constant 0 : i32
    %0 = arith.cmpi eq, %arg1, %c0_i32 : i32
    %1 = arith.extui %0 : i1 to i32
    %c0_i32_0 = arith.constant 0 : i32
    %2 = arith.cmpi ne, %1, %c0_i32_0 : i32
    scf.if %2 {
      %cst_8 = arith.constant 0.000000e+00 : f32
      %15 = vector.broadcast %cst_8 : f32 to vector<152x24xf32>
      %c0_9 = arith.constant 0 : index
      %c0_10 = arith.constant 0 : index
      %16 = vector.load %arg7[%c0_9, %c0_10] : memref<152x24xf32, #tpu.memory_space<vmem>>, vector<152x24xf32>
      tpu.vector_store %arg7[%c0_9, %c0_10], %15 {strides = array<i32>} : memref<152x24xf32, #tpu.memory_space<vmem>>, vector<152x24xf32>,
    } else {
    }
    %c512_i32 = arith.constant 512 : i32
    %3 = arith.muli %arg1, %c512_i32 : i32
    %4 = tpu.assume_multiple %3, 512 : i32
    %5 = arith.index_cast %4 : i32 to index
    %c0 = arith.constant 0 : index
    %6 = vector.load %arg3[%5, %c0] : memref<1024x24xf32, #tpu.memory_space<vmem>>, vector<512x24xf32>
    %c0_1 = arith.constant 0 : index
    %c0_2 = arith.constant 0 : index
    %7 = vector.load %arg7[%c0_1, %c0_2] : memref<152x24xf32, #tpu.memory_space<vmem>>, vector<152x24xf32>
    %c0_3 = arith.constant 0 : index
    %c0_4 = arith.constant 0 : index
    %8 = vector.load %arg2[%c0_3, %c0_4] : memref<152x512xf32, #tpu.memory_space<vmem>>, vector<152x512xf32>
    %cst = arith.constant dense<0.000000e+00> : vector<152x24xf32>
    %9 = tpu.matmul %8, %6, %cst {dimension_numbers = #tpu.dot_dimension_numbers<[1], [0], [0], [1], [0, 0, 1, 1], [], []>} : vector<152x512xf32>, vector<512x24xf32>, vector<152x24xf32> -> vector<152x24xf32>
    %10 = arith.addf %7, %9 : vector<152x24xf32>
    %c0_5 = arith.constant 0 : index
    %c0_6 = arith.constant 0 : index
    %11 = vector.load %arg7[%c0_5, %c0_6] : memref<152x24xf32, #tpu.memory_space<vmem>>, vector<152x24xf32>
    tpu.vector_store %arg7[%c0_5, %c0_6], %10 {strides = array<i32>} : memref<152x24xf32, #tpu.memory_space<vmem>>, vector<152x24xf32>,
    %c1_i32 = arith.constant 1 : i32
    %12 = arith.cmpi eq, %arg1, %c1_i32 : i32
    %13 = arith.extui %12 : i1 to i32
    %c0_i32_7 = arith.constant 0 : i32
    %14 = arith.cmpi ne, %13, %c0_i32_7 : i32
    scf.if %14 {
      %c0_8 = arith.constant 0 : index
      %c0_9 = arith.constant 0 : index
      %15 = vector.load %arg7[%c0_8, %c0_9] : memref<152x24xf32, #tpu.memory_space<vmem>>, vector<152x24xf32>
      %c0_10 = arith.constant 0 : index
      %c0_11 = arith.constant 0 : index
      %16 = vector.load %arg4[%c0_10, %c0_11] : memref<1x24xf32, #tpu.memory_space<vmem>>, vector<1x24xf32>
      %17 = vector.broadcast %16 : vector<1x24xf32> to vector<152x24xf32>
      %18 = arith.addf %15, %17 : vector<152x24xf32>
      %cst_12 = arith.constant 0.000000e+00 : f32
      %19 = vector.broadcast %cst_12 : f32 to vector<152x24xf32>
      %20 = arith.cmpf oge, %18, %19 : vector<152x24xf32>
      %cst_13 = arith.constant 0.00999999977 : f32
      %21 = vector.broadcast %cst_13 : f32 to vector<152x24xf32>
      %22 = arith.mulf %21, %18 : vector<152x24xf32>
      %23 = arith.select %20, %18, %22 : vector<152x24xi1>, vector<152x24xf32>
      %c0_14 = arith.constant 0 : index
      %c0_15 = arith.constant 0 : index
      %24 = vector.load %arg5[%c0_14, %c0_15] : memref<152x24xf32, #tpu.memory_space<vmem>>, vector<152x24xf32>
      tpu.vector_store %arg5[%c0_14, %c0_15], %23 {strides = array<i32>} : memref<152x24xf32, #tpu.memory_space<vmem>>, vector<152x24xf32>,
      %cst_16 = arith.constant dense<0.000000e+00> : vector<24xf32>
      %25 = vector.multi_reduction <add>, %23, %cst_16 [0] : vector<152x24xf32> to vector<24xf32>
      %26 = vector.shape_cast %25 : vector<24xf32> to vector<1x24xf32>
      %27 = arith.mulf %23, %23 : vector<152x24xf32>
      %cst_17 = arith.constant dense<0.000000e+00> : vector<24xf32>
      %28 = vector.multi_reduction <add>, %27, %cst_17 [0] : vector<152x24xf32> to vector<24xf32>
      %29 = vector.shape_cast %28 : vector<24xf32> to vector<1x24xf32>
      %30 = tpu.concatenate %26, %29 in 0 : vector<1x24xf32>, vector<1x24xf32> -> vector<2x24xf32>
      %c0_18 = arith.constant 0 : index
      %c0_19 = arith.constant 0 : index
      %c0_20 = arith.constant 0 : index
      %31 = vector.load %arg6[%c0_18, %c0_19, %c0_20] : memref<1x2x24xf32, #tpu.memory_space<vmem>>, vector<1x2x24xf32>
      %32 = vector.shape_cast %31 : vector<1x2x24xf32> to vector<2x24xf32>
      %33 = vector.shape_cast %30 : vector<2x24xf32> to vector<1x2x24xf32>
      tpu.vector_store %arg6[%c0_18, %c0_19, %c0_20], %33 {strides = array<i32>} : memref<1x2x24xf32, #tpu.memory_space<vmem>>, vector<1x2x24xf32>,
    } else {
    }
    return
  }
  func.func @transform_0(%arg0: i32, %arg1: i32) -> (i32, i32) {
    %c0_i32 = arith.constant 0 : i32
    return %arg0, %arg1 : i32, i32
  }
  func.func @transform_1(%arg0: i32, %arg1: i32) -> (i32, i32) {
    %c0_i32 = arith.constant 0 : i32
    %c0_i32_0 = arith.constant 0 : i32
    %c0_i32_1 = arith.constant 0 : i32
    return %c0_i32, %c0_i32_0 : i32, i32
  }
  func.func @transform_2(%arg0: i32, %arg1: i32) -> (i32, i32) {
    %c0_i32 = arith.constant 0 : i32
    %c0_i32_0 = arith.constant 0 : i32
    %c0_i32_1 = arith.constant 0 : i32
    return %c0_i32, %c0_i32_0 : i32, i32
  }
  func.func @transform_3(%arg0: i32, %arg1: i32) -> (i32, i32) {
    %c0_i32 = arith.constant 0 : i32
    %c0_i32_0 = arith.constant 0 : i32
    return %arg0, %c0_i32 : i32, i32
  }
  func.func @transform_4(%arg0: i32, %arg1: i32) -> (i32, i32, i32) {
    %c0_i32 = arith.constant 0 : i32
    %c0_i32_0 = arith.constant 0 : i32
    %c0_i32_1 = arith.constant 0 : i32
    return %arg0, %c0_i32, %c0_i32_0 : i32, i32, i32
  }
}

</mosaic_0001>

<bundles_post_ra>
// kernel: tpu_custom_call.1
= control target key start
LH: loop header
LB: loop body
LE: loop exit
PB: predicated region body
PF: predicated region fallthrough
CT: control target
= control target key end

     0   :  { %s2113_s0 = inlined_call_operand.hbm [shape: f32[304,1024], index: 0, kind: input, shape index: {}]   ;;  %s2114_s1 = inlined_call_operand.vmem [shape: f32[1024,24], index: 1, kind: input, shape index: {}]   ;;  %s2115_s2 = inlined_call_operand.hbm [shape: f32[1,24], index: 2, kind: input, shape index: {}]   ;;  %s2116_s3 = inlined_call_operand.vmem [shape: f32[304,24], index: 3, kind: output, shape index: {0}]   ;;  %s2117_s4 = inlined_call_operand.hbm [shape: f32[2,2,24], index: 4, kind: output, shape index: {1}]  }
   0x1   :  { %2130 = sst [smem:[#allocation18_spill]] %s2115_s2 }
   0x2   :  { %2131 = sst [smem:[#allocation19_spill]] %s2117_s4 }
   0x3   :  { %10 = vsyncpa [#allocation4], 0 }
   0x4   :  { %12 = vsyncpa [#allocation4 + $0x1], 0 }
   0x5   :  { %13 = vsyncpa [#allocation7], 0 }
   0x6   :  { %14 = vsyncpa [#allocation5], 0 }
   0x7   :  { %16 = vsyncpa [#allocation5 + $0x1], 0  ;;  %s1538_s15 = smov 0   ;;  %s1540_s16 = smov 0  }
   0x8   :  { %s1542_s17 = smov 0   ;;  %s1544_s18 = smov 0  }
   0x9   :  { %s1546_s19 = smov 0   ;;  %s1548_s20 = smov 0  }
   0xa   :  { %s1550_s21 = smov 0   ;;  %s1552_s22 = smov 0  }
   0xb   :  { %s1554_s23 = smov 0   ;;  %s1556_s24 = smov 0  }
   0xc   :  { %s1558_s25 = smov 0  }
   0xd LB: > { %2132 = sst [smem:[#allocation12_spill]] %s1463_s15  ;;  %s1184_s26 = sadd.s32 4294967295, %s1503_s25   ;;  %s1503_s25 = sphi %s1558_s25, %s22_s25   ;;  %s1499_s24 = sphi %s1556_s24, %s2166_s24   ;;  %s1495_s23 = sphi %s1554_s23, %s2158_s23   ;;  %s1491_s22 = sphi %s1552_s22, %s2165_s22   ;;  %s1487_s21 = sphi %s1550_s21, %s2157_s21   ;;  %s1483_s20 = sphi %s1548_s20, %s2164_s20   ;;  %s1479_s19 = sphi %s1546_s19, %s2163_s19   ;;  %s1475_s18 = sphi %s1544_s18, %s2162_s18   ;;  %s1471_s17 = sphi %s1542_s17, %s2161_s17   ;;  %s1467_s16 = sphi %s1540_s16, %s2160_s16   ;;  %s1463_s15 = sphi %s1538_s15, %s2159_s15  }
   0xe   : > { %2133 = sst [smem:[#allocation13_spill]] %s1495_s23  ;;  %s1185_s27 = sadd.s32 4294967294, %s1503_s25  }
   0xf   : > { %2134 = sst [smem:[#allocation14_spill]] %s1503_s25  ;;  %p50_p0 = scmp.ne.s32.totalorder %s1483_s20, %s1479_s19 }
  0x10   : > { %p51_p1 = scmp.eq.s32.totalorder %s1503_s25, 0  ;;  %p56_p2 = scmp.ne.s32.totalorder %s1479_s19, %s1475_s18 }
  0x11   : > { %p1598_p3 = scmp.eq.s32.totalorder %s1184_s26, 0  ;;  %p147_p5 = scmp.ne.s32.totalorder %s1471_s17, %s1467_s16 }
  0x12   : > { %p1603_p4 = por %p51_p1, %p50_p0  ;;  %p148_p7 = scmp.eq.s32.totalorder %s1184_s26, 3 }
  0x13   : > { %p1611_p6 = por %p1598_p3, %p56_p2  ;;  %p153_p8 = scmp.ne.s32.totalorder %s1467_s16, %s1463_s15 }
  0x14   : > { %p154_p9 = scmp.eq.s32.totalorder %s1185_s27, 3  ;;  %p1617_p10 = por %p148_p7, %p147_p5 }
  0x15   : > { %s2137_s6 = scalar_select %p1611_p6, 1, 0 }
  0x16   : > { %s2138_s7 = scalar_select %p1617_p10, 1, 0 }
  0x17   : > { %p1186_p11 = scmp.ge.s32.totalorder %s1503_s25, 1  ;;  %p1622_p12 = por %p154_p9, %p153_p8 }
  0x18   : > { %2139 = sst [smem:[#allocation15_spill]] %s2138_s7  ;;  %p161_p13 = scmp.lt.s32.totalorder %s1503_s25, 5 }
  0x19   : > { %s2140_s8 = scalar_select %p1622_p12, 1, 0 }
  0x1a   : > { %p1627_p0 = pnand %p1186_p11, %p161_p13  ;;  %s1505_s10 = smov [#allocation6]  }
  0x1b   : > { %2141 = sst [smem:[#allocation16_spill]] %s2140_s8  ;;  %s177_s11 = sshll.u32 %s1505_s10, 4  ;;  %s178_s11 = int_to_ptr.vmem [resolvable:$true] %s177_s11 }
  0x1c   : > { %s2142_s9 = scalar_select %p1627_p0, 1, 0 }
  0x1d   : > { %p1215_p1 = pneg %p1627_p0  ;;  %p1228_p2 = scmp.lt.s32.totalorder %s1503_s25, 4 }
  0x1e   : > { %s1336_s13 = scalar_lea.vmem %s178_s11, 16  ;;  %s1343_s14 = scalar_lea.vmem %s178_s11, 32 }
  0x1f   : > { %p1216_p5 = pnand %p1215_p1, %p1598_p3  ;;  %p1638_p7 = pnand %p1228_p2, %p1603_p4 }
  0x20   : > { %p1337_p9 = scmp.ne.s32.totalorder %s178_s11, %s1336_s13  ;;  %p1344_p12 = scmp.lt.s32.totalorder %s178_s11, %s178_s11 }
  0x21   : > { %p1327_p8 = pneg %p1216_p5  ;;  %p1345_p10 = scmp.lt.s32.totalorder %s1343_s14, %s1336_s13 }
  0x23   : > { %p1339_p11 = pnand %p1337_p9, %p1327_p8  ;;  %p1346_p6 = por %p1345_p10, %p1344_p12 }
  0x25   : > { %p1340_p13 = pneg %p1339_p11 }
  0x27   : > { %p1347_p0 = pnand %p1346_p6, %p1340_p13 }
  0x29   : > { %1350 = shalt.err (!%p1347_p0)
}
  0x2a   : > { %s2144_s2 = sld [smem:[#allocation18_spill]]  ;;  %s31_s27 = sadd.s32 1, %s1495_s23 }
  0x2b   : > { %s34_s5 = sadd.s32 1, %s1499_s24  ;;  %p32_p4 = scmp.ge.s32.totalorder %s31_s27, 2 }
  0x2c   : > { %s188_s10 = sand.u32 1, %s1483_s20   ;;  %s1189_s18 = sshll.u32 %s1495_s23, 2 }
  0x2d   : > { %s1205_s13 = smul.u32 608, %s188_s10  ;;  %s2168_s27 = smov (%p32_p4, %s31_s27), 0 }
  0x2e   : > { %2145 = sst [smem:[#allocation17_spill]] %s2168_s27  ;;  %s2170_s5 = smov (!%p32_p4, %s34_s5), %s1499_s24 }
  0x2f   : > { %s39_s14 = ssub.s32 %s1495_s23, %s2168_s27  ;;  %p36_p6 = scmp.ge.s32.totalorder %s2170_s5, 2 }
  0x30   : > { %1218 = dma.hbm_to_vmem [thread:$0]  (!%p1216_p5), %s2144_s2, 16, %s178_s11, [#allocation7]  }
  0x31   : > { %s1204_s26 = smul.u32 152, %s1499_s24  ;;  %s192_s11 = scalar_lea.vmem [#allocation3], %s1205_s13 }
  0x32   : > { %s202_s28 = sshll.u32 %s192_s11, 4  ;;  %s2172_s5 = smov (%p36_p6, %s2170_s5), 0  ;;  %s1657_s28 = int_to_ptr.vmem [resolvable:$true] %s202_s28 }
  0x33   : > { %s199_s30 = sadd.s32 %s1204_s26, %s1189_s18  ;;  %s38_s2 = ssub.s32 %s1499_s24, %s2172_s5 }
  0x34   : > { %s1191_s8 = sshll.u32 %s199_s30, 7  ;;  %s40_s15 = sor.u32 %s39_s14, %s38_s2 }
  0x35   : > { %p135_p10 = scmp.eq.s32.totalorder %s38_s2, 0  ;;  %p41_p12 = scmp.eq.s32.totalorder %s40_s15, 0 }
  0x36   : > { %s201_s25 = scalar_lea.hbm %s2113_s0, %s1191_s8  ;;  %s2146_s13 = sadd.s32 1, %s1471_s17 }
  0x37   : > { %s1667_s11 = scalar_select %p135_p10, %s1471_s17, %s2146_s13  }
  0x38   : > { %s2147_s4 = sadd.s32 1, %s1483_s20  ;;  %s189_s18 = scalar_lea.sflag [#allocation4], %s188_s10 }
  0x39   : > { %s1672_s7 = scalar_select %p41_p12, %s1483_s20, %s2147_s4  }
  0x3a   : > { %p1353_p0 = pneg %p1638_p7  ;;  %s1364_s26 = scalar_lea.vmem %s1657_s28, 9728 }
  0x3b   : > { %p1365_p1 = scmp.ne.s32.totalorder %s1657_s28, %s1364_s26  ;;  %s1506_s30 = smov [#allocation3]  }
  0x3c   : > { %s1369_s2 = sshll.u32 %s1506_s30, 4  ;;  %s1370_s2 = int_to_ptr.vmem [resolvable:$false] %s1369_s2 }
  0x3d   : > { %p1367_p2 = pnand %p1365_p1, %p1353_p0  ;;  %s1371_s15 = scalar_lea.vmem %s1370_s2, 19456 }
  0x3e   : > { %p1372_p8 = scmp.lt.s32.totalorder %s1657_s28, %s1370_s2  ;;  %p1373_p9 = scmp.lt.s32.totalorder %s1371_s15, %s1364_s26 }
  0x3f   : > { %p1368_p5 = pneg %p1367_p2 }
  0x40   : > { %p1374_p11 = por %p1373_p9, %p1372_p8 }
  0x42   : > { %p1375_p13 = pnand %p1374_p11, %p1368_p5 }
  0x44   : > { %1378 = shalt.err (!%p1375_p13)
}
  0x45   : > { %s1507_s23 = smov 1024   ;;  %s1508_s4 = smov 512  }
  0x46   : > { %s1509_s8 = smov 32   ;;  %p2148_p4 = scmp.ne.s32.totalorder %s2142_s9, 0 }
  0x47   : > { %1222 = dma.hbm_to_vmem [thread:$0]  (!%p1638_p7), %s201_s25, 9728, %s1657_s28, %s189_s18, %s1507_s23, %s1508_s4, %s1509_s8  }
  0x48   : > { %214 = sbr.rel (%p2148_p4) target bundleno = 525 (0x20d), region = 32  ;;  %s216_s27 = sand.u32 (!%p2148_p4), 1, %s1479_s19  }
  0x49   : > { %s1206_s10 = smul.u32 (!%p2148_p4), 608, %s216_s27  ;;  %s217_s14 = scalar_lea.sflag (!%p2148_p4), [#allocation4], %s216_s27 }
  0x4a   : > { %p2149_p6 = scmp.ne.s32.totalorder (!%p2148_p4), %s2137_s6, 0 }
  0x4b   : > { %s1685_s13 = scalar_lea.vmem (!%p2148_p4), [#allocation3], %s1206_s10 }
  0x4d   : > { %1450 = dma.done.wait (%p2149_p6), %s217_s14, 9728  }
  0x4e   : > { %1452 = vsyncadd (%p2149_p6), %s217_s14, 4294957568 }
  0x4f   : > { %1454 = dma.done.wait (%p1598_p3), [#allocation7], 16  }
  0x50   : > { %1456 = vsyncadd (%p1598_p3), [#allocation7], 4294967280  ;;  %s251_s25 = sand.u32 1, %s1467_s16   ;;  %s256_s28 = smul.u32 19, %s1491_s22 }
  0x51   : > { %s1699_s9 = sshll.u32 %s251_s25, 1  ;;  %p1196_p3 = scmp.ne.s32.totalorder %s1487_s21, 0 }
  0x52   : > { %p257_p7 = scmp.lt.s32.totalorder %s256_s28, 37  ;;  %s253_s30 = scalar_lea.vmem [#allocation8], %s1699_s9 }
  0x53   : > { %265 = sbr.rel (%p1196_p3) target bundleno = 99 (0x63), region = 44 }
  0x54   : > { %s2174_s28 = smov (!%p257_p7, %s256_s28), 37 }
  0x55   : > { %s1195_s12 = sshll.u32 %s2174_s28, 3 }
  0x56   : > { %s1704_s26 = scalar_lea.vmem %s2116_s3, %s1195_s12 }
  0x58   : > { %vm266_vm0 = vcmask 195584   ;;  %v1510_v0 = vmov 0.0  }
  0x59   : > { %267 = vst.msk [vmem:[#allocation2] sm:$0xff] %vm266_vm0, %v1510_v0  ;;  %268 = vst.msk [vmem:[#allocation2 + $0x8] sm:$0xff] %vm266_vm0, %v1510_v0 }
  0x5a   : > { %269 = vst.msk [vmem:[#allocation2 + $0x10] sm:$0xff] %vm266_vm0, %v1510_v0  ;;  %270 = vst.msk [vmem:[#allocation2 + $0x18] sm:$0xff] %vm266_vm0, %v1510_v0 }
  0x5b   : > { %271 = vst.msk [vmem:[#allocation2 + $0x20] sm:$0xff] %vm266_vm0, %v1510_v0  ;;  %272 = vst.msk [vmem:[#allocation2 + $0x28] sm:$0xff] %vm266_vm0, %v1510_v0 }
  0x5c   : > { %273 = vst.msk [vmem:[#allocation2 + $0x30] sm:$0xff] %vm266_vm0, %v1510_v0  ;;  %274 = vst.msk [vmem:[#allocation2 + $0x38] sm:$0xff] %vm266_vm0, %v1510_v0 }
  0x5d   : > { %275 = vst.msk [vmem:[#allocation2 + $0x40] sm:$0xff] %vm266_vm0, %v1510_v0  ;;  %276 = vst.msk [vmem:[#allocation2 + $0x48] sm:$0xff] %vm266_vm0, %v1510_v0 }
  0x5e   : > { %277 = vst.msk [vmem:[#allocation2 + $0x50] sm:$0xff] %vm266_vm0, %v1510_v0  ;;  %278 = vst.msk [vmem:[#allocation2 + $0x58] sm:$0xff] %vm266_vm0, %v1510_v0 }
  0x5f   : > { %279 = vst.msk [vmem:[#allocation2 + $0x60] sm:$0xff] %vm266_vm0, %v1510_v0  ;;  %280 = vst.msk [vmem:[#allocation2 + $0x68] sm:$0xff] %vm266_vm0, %v1510_v0 }
  0x60   : > { %281 = vst.msk [vmem:[#allocation2 + $0x70] sm:$0xff] %vm266_vm0, %v1510_v0  ;;  %282 = vst.msk [vmem:[#allocation2 + $0x78] sm:$0xff] %vm266_vm0, %v1510_v0 }
  0x61   : > { %283 = vst.msk [vmem:[#allocation2 + $0x80] sm:$0xff] %vm266_vm0, %v1510_v0  ;;  %284 = vst.msk [vmem:[#allocation2 + $0x88] sm:$0xff] %vm266_vm0, %v1510_v0 }
  0x62   : > { %285 = vst.msk [vmem:[#allocation2 + $0x90] sm:$0xff] %vm266_vm0, %v1510_v0 }
  0x63 PF: > { %s1197_s29 = sshll.u32 %s1487_s21, 9  ;;  %v372_v1 = vld [vmem:[%s1685_s13 + $0x8] sm:$0xff]  ;;  %v374_v2 = vld [vmem:[%s1685_s13 + $0x18] sm:$0xff]  ;;  %v1511_v3 = vmov 0.0   ;;  %vm786_vm1 = vcmask 195584   ;;  %p1198_p10 = scmp.ne.s32.totalorder %s1487_s21, 1 }
  0x64   : > { %447 = vmatprep.subr.mxu0 %v1511_v3  ;;  %607 = vmatprep.subr.mxu1 %v1511_v3  ;;  %s1735_s23 = scalar_lea.vmem %s2114_s1, %s1197_s29 }
  0x65   : > { %v303_v4 = vld [vmem:[%s1735_s23 + $0x78] sm:$0xff]  ;;  %v302_v6 = vld [vmem:[%s1735_s23 + $0x70] sm:$0xff]  ;;  %511 = vmatprep.mubr.f32.mxu0 %v372_v1  ;;  %671 = vmatprep.mubr.f32.mxu1 %v374_v2  ;;  %v301_v8 = vld [vmem:[%s1735_s23 + $0x68] sm:$0xff] }
  0x66   : > { %v335_v5 = vld [vmem:[%s1735_s23 + $0x178] sm:$0xff]  ;;  %448 = vmatpush1.msra.mxu0 %v303_v4  ;;  %v334_v7 = vld [vmem:[%s1735_s23 + $0x170] sm:$0xff]  ;;  %v333_v9 = vld [vmem:[%s1735_s23 + $0x168] sm:$0xff] }
  0x67   : > { %608 = vmatpush1.msra.mxu1 %v335_v5  ;;  %449 = vmatprep.subr.mxu0 %v1511_v3  ;;  %v300_v10 = vld [vmem:[%s1735_s23 + $0x60] sm:$0xff]  ;;  %v299_v12 = vld [vmem:[%s1735_s23 + $0x58] sm:$0xff]  ;;  %v298_v14 = vld [vmem:[%s1735_s23 + $0x50] sm:$0xff] }
  0x68   : > { %609 = vmatprep.subr.mxu1 %v1511_v3  ;;  %450 = vmatpush1.msra.mxu0 %v302_v6  ;;  %v332_v11 = vld [vmem:[%s1735_s23 + $0x160] sm:$0xff]  ;;  %v331_v13 = vld [vmem:[%s1735_s23 + $0x158] sm:$0xff]  ;;  %v330_v15 = vld [vmem:[%s1735_s23 + $0x150] sm:$0xff] }
  0x69   : > { %610 = vmatpush1.msra.mxu1 %v334_v7  ;;  %451 = vmatprep.subr.mxu0 %v1511_v3  ;;  %v297_v16 = vld [vmem:[%s1735_s23 + $0x48] sm:$0xff]  ;;  %v296_v18 = vld [vmem:[%s1735_s23 + $0x40] sm:$0xff]  ;;  %v295_v20 = vld [vmem:[%s1735_s23 + $0x38] sm:$0xff] }
  0x6a   : > { %611 = vmatprep.subr.mxu1 %v1511_v3  ;;  %452 = vmatpush1.msra.mxu0 %v301_v8  ;;  %v329_v17 = vld [vmem:[%s1735_s23 + $0x148] sm:$0xff]  ;;  %v328_v19 = vld [vmem:[%s1735_s23 + $0x140] sm:$0xff]  ;;  %v327_v21 = vld [vmem:[%s1735_s23 + $0x138] sm:$0xff] }
  0x6b   : > { %612 = vmatpush1.msra.mxu1 %v333_v9  ;;  %453 = vmatprep.subr.mxu0 %v1511_v3  ;;  %v294_v22 = vld [vmem:[%s1735_s23 + $0x30] sm:$0xff]  ;;  %v293_v24 = vld [vmem:[%s1735_s23 + $0x28] sm:$0xff]  ;;  %v292_v26 = vld [vmem:[%s1735_s23 + $0x20] sm:$0xff] }
  0x6c   : > { %613 = vmatprep.subr.mxu1 %v1511_v3  ;;  %454 = vmatpush1.msra.mxu0 %v300_v10  ;;  %v326_v23 = vld [vmem:[%s1735_s23 + $0x130] sm:$0xff]  ;;  %v325_v25 = vld [vmem:[%s1735_s23 + $0x128] sm:$0xff]  ;;  %v324_v27 = vld [vmem:[%s1735_s23 + $0x120] sm:$0xff] }
  0x6d   : > { %614 = vmatpush1.msra.mxu1 %v332_v11  ;;  %455 = vmatprep.subr.mxu0 %v1511_v3  ;;  %v291_v28 = vld [vmem:[%s1735_s23 + $0x18] sm:$0xff]  ;;  %v290_v30 = vld [vmem:[%s1735_s23 + $0x10] sm:$0xff]  ;;  %v289_v32 = vld [vmem:[%s1735_s23 + $0x8] sm:$0xff] }
  0x6e   : > { %615 = vmatprep.subr.mxu1 %v1511_v3  ;;  %456 = vmatpush1.msra.mxu0 %v299_v12  ;;  %v323_v29 = vld [vmem:[%s1735_s23 + $0x118] sm:$0xff]  ;;  %v322_v31 = vld [vmem:[%s1735_s23 + $0x110] sm:$0xff]  ;;  %v321_v33 = vld [vmem:[%s1735_s23 + $0x108] sm:$0xff] }
  0x6f   : > { %616 = vmatpush1.msra.mxu1 %v331_v13  ;;  %457 = vmatprep.subr.mxu0 %v1511_v3  ;;  %v288_v34 = vld [vmem:[%s1735_s23] sm:$0xff]  ;;  %v319_v36 = vld [vmem:[%s1735_s23 + $0xf8] sm:$0xff]  ;;  %v318_v38 = vld [vmem:[%s1735_s23 + $0xf0] sm:$0xff] }
  0x70   : > { %617 = vmatprep.subr.mxu1 %v1511_v3  ;;  %458 = vmatpush1.msra.mxu0 %v298_v14  ;;  %v320_v35 = vld [vmem:[%s1735_s23 + $0x100] sm:$0xff]  ;;  %v351_v37 = vld [vmem:[%s1735_s23 + $0x1f8] sm:$0xff]  ;;  %v350_v39 = vld [vmem:[%s1735_s23 + $0x1f0] sm:$0xff] }
  0x71   : > { %618 = vmatpush1.msra.mxu1 %v330_v15  ;;  %459 = vmatprep.subr.mxu0 %v1511_v3  ;;  %v317_v40 = vld [vmem:[%s1735_s23 + $0xe8] sm:$0xff]  ;;  %v316_v42 = vld [vmem:[%s1735_s23 + $0xe0] sm:$0xff]  ;;  %v315_v44 = vld [vmem:[%s1735_s23 + $0xd8] sm:$0xff] }
  0x72   : > { %619 = vmatprep.subr.mxu1 %v1511_v3  ;;  %460 = vmatpush1.msra.mxu0 %v297_v16  ;;  %v349_v41 = vld [vmem:[%s1735_s23 + $0x1e8] sm:$0xff]  ;;  %v348_v43 = vld [vmem:[%s1735_s23 + $0x1e0] sm:$0xff]  ;;  %v347_v45 = vld [vmem:[%s1735_s23 + $0x1d8] sm:$0xff] }
  0x73   : > { %620 = vmatpush1.msra.mxu1 %v329_v17  ;;  %461 = vmatprep.subr.mxu0 %v1511_v3  ;;  %v314_v46 = vld [vmem:[%s1735_s23 + $0xd0] sm:$0xff]  ;;  %v313_v48 = vld [vmem:[%s1735_s23 + $0xc8] sm:$0xff]  ;;  %v312_v50 = vld [vmem:[%s1735_s23 + $0xc0] sm:$0xff] }
  0x74   : > { %621 = vmatprep.subr.mxu1 %v1511_v3  ;;  %462 = vmatpush1.msra.mxu0 %v296_v18  ;;  %v346_v47 = vld [vmem:[%s1735_s23 + $0x1d0] sm:$0xff]  ;;  %v345_v49 = vld [vmem:[%s1735_s23 + $0x1c8] sm:$0xff]  ;;  %v344_v51 = vld [vmem:[%s1735_s23 + $0x1c0] sm:$0xff] }
  0x75   : > { %622 = vmatpush1.msra.mxu1 %v328_v19  ;;  %463 = vmatprep.subr.mxu0 %v1511_v3  ;;  %v311_v52 = vld [vmem:[%s1735_s23 + $0xb8] sm:$0xff]  ;;  %v310_v54 = vld [vmem:[%s1735_s23 + $0xb0] sm:$0xff]  ;;  %v309_v56 = vld [vmem:[%s1735_s23 + $0xa8] sm:$0xff] }
  0x76   : > { %623 = vmatprep.subr.mxu1 %v1511_v3  ;;  %464 = vmatpush1.msra.mxu0 %v295_v20  ;;  %v343_v53 = vld [vmem:[%s1735_s23 + $0x1b8] sm:$0xff]  ;;  %v342_v55 = vld [vmem:[%s1735_s23 + $0x1b0] sm:$0xff]  ;;  %v341_v57 = vld [vmem:[%s1735_s23 + $0x1a8] sm:$0xff] }
  0x77   : > { %624 = vmatpush1.msra.mxu1 %v327_v21  ;;  %465 = vmatprep.subr.mxu0 %v1511_v3  ;;  %v308_v58 = vld [vmem:[%s1735_s23 + $0xa0] sm:$0xff]  ;;  %v307_v60 = vld [vmem:[%s1735_s23 + $0x98] sm:$0xff]  ;;  %v306_v62 = vld [vmem:[%s1735_s23 + $0x90] sm:$0xff] }
  0x78   : > { %625 = vmatprep.subr.mxu1 %v1511_v3  ;;  %466 = vmatpush1.msra.mxu0 %v294_v22  ;;  %v340_v59 = vld [vmem:[%s1735_s23 + $0x1a0] sm:$0xff]  ;;  %v339_v61 = vld [vmem:[%s1735_s23 + $0x198] sm:$0xff]  ;;  %v338_v63 = vld [vmem:[%s1735_s23 + $0x190] sm:$0xff] }
  0x79   : > { %626 = vmatpush1.msra.mxu1 %v326_v23  ;;  %467 = vmatprep.subr.mxu0 %v1511_v3  ;;  %v305_v0 = vld [vmem:[%s1735_s23 + $0x88] sm:$0xff]  ;;  %v304_v2 = vld [vmem:[%s1735_s23 + $0x80] sm:$0xff]  ;;  %v371_v5 = vld [vmem:[%s1685_s13] sm:$0xff] }
  0x7a   : > { %627 = vmatprep.subr.mxu1 %v1511_v3  ;;  %468 = vmatpush1.msra.mxu0 %v293_v24  ;;  %v337_v1 = vld [vmem:[%s1735_s23 + $0x188] sm:$0xff]  ;;  %v336_v4 = vld [vmem:[%s1735_s23 + $0x180] sm:$0xff]  ;;  %v378_v8 = vld [vmem:[%s1685_s13 + $0x38] sm:$0xff] }
  0x7b   : > { %628 = vmatpush1.msra.mxu1 %v325_v25  ;;  %469 = vmatprep.subr.mxu0 %v1511_v3  ;;  %v373_v6 = vld [vmem:[%s1685_s13 + $0x10] sm:$0xff]  ;;  %v376_v7 = vld [vmem:[%s1685_s13 + $0x28] sm:$0xff]  ;;  %v375_v9 = vld [vmem:[%s1685_s13 + $0x20] sm:$0xff] }
  0x7c   : > { %629 = vmatprep.subr.mxu1 %v1511_v3  ;;  %470 = vmatpush1.msra.mxu0 %v292_v26  ;;  %v377_v10 = vld [vmem:[%s1685_s13 + $0x30] sm:$0xff]  ;;  %v380_v11 = vld [vmem:[%s1685_s13 + $0x48] sm:$0xff]  ;;  %v382_v12 = vld [vmem:[%s1685_s13 + $0x58] sm:$0xff] }
  0x7d   : > { %630 = vmatpush1.msra.mxu1 %v324_v27  ;;  %471 = vmatprep.subr.mxu0 %v1511_v3  ;;  %v381_v13 = vld [vmem:[%s1685_s13 + $0x50] sm:$0xff]  ;;  %v384_v14 = vld [vmem:[%s1685_s13 + $0x68] sm:$0xff]  ;;  %v386_v15 = vld [vmem:[%s1685_s13 + $0x78] sm:$0xff] }
  0x7e   : > { %631 = vmatprep.subr.mxu1 %v1511_v3  ;;  %472 = vmatpush1.msra.mxu0 %v291_v28  ;;  %v383_v16 = vld [vmem:[%s1685_s13 + $0x60] sm:$0xff]  ;;  %v385_v17 = vld [vmem:[%s1685_s13 + $0x70] sm:$0xff]  ;;  %v388_v18 = vld [vmem:[%s1685_s13 + $0x88] sm:$0xff] }
  0x7f   : > { %632 = vmatpush1.msra.mxu1 %v323_v29  ;;  %473 = vmatprep.subr.mxu0 %v1511_v3  ;;  %v390_v19 = vld [vmem:[%s1685_s13 + $0x98] sm:$0xff]  ;;  %v387_v20 = vld [vmem:[%s1685_s13 + $0x80] sm:$0xff]  ;;  %v389_v21 = vld [vmem:[%s1685_s13 + $0x90] sm:$0xff] }
  0x80   : > { %633 = vmatprep.subr.mxu1 %v1511_v3  ;;  %474 = vmatpush1.msra.mxu0 %v290_v30  ;;  %v392_v22 = vld [vmem:[%s1685_s13 + $0xa8] sm:$0xff]  ;;  %v394_v23 = vld [vmem:[%s1685_s13 + $0xb8] sm:$0xff]  ;;  %v391_v24 = vld [vmem:[%s1685_s13 + $0xa0] sm:$0xff] }
  0x81   : > { %634 = vmatpush1.msra.mxu1 %v322_v31  ;;  %475 = vmatprep.subr.mxu0 %v1511_v3  ;;  %v393_v25 = vld [vmem:[%s1685_s13 + $0xb0] sm:$0xff]  ;;  %v396_v26 = vld [vmem:[%s1685_s13 + $0xc8] sm:$0xff]  ;;  %v398_v27 = vld [vmem:[%s1685_s13 + $0xd8] sm:$0xff] }
  0x82   : > { %635 = vmatprep.subr.mxu1 %v1511_v3  ;;  %476 = vmatpush1.msra.mxu0 %v289_v32  ;;  %v395_v28 = vld [vmem:[%s1685_s13 + $0xc0] sm:$0xff]  ;;  %v397_v29 = vld [vmem:[%s1685_s13 + $0xd0] sm:$0xff]  ;;  %v400_v30 = vld [vmem:[%s1685_s13 + $0xe8] sm:$0xff] }
  0x83   : > { %636 = vmatpush1.msra.mxu1 %v321_v33  ;;  %477 = vmatprep.subr.mxu0 %v1511_v3  ;;  %v402_v31 = vld [vmem:[%s1685_s13 + $0xf8] sm:$0xff]  ;;  %v399_v32 = vld [vmem:[%s1685_s13 + $0xe0] sm:$0xff]  ;;  %v401_v33 = vld [vmem:[%s1685_s13 + $0xf0] sm:$0xff] }
  0x84   : > { %637 = vmatprep.subr.mxu1 %v1511_v3  ;;  %478 = vmatpush1.msra.mxu0 %v288_v34  ;;  %v404_v34 = vld [vmem:[%s1685_s13 + $0x108] sm:$0xff] }
  0x85   : > { %638 = vmatpush1.msra.mxu1 %v320_v35  ;;  %479 = vmatprep.subr.mxu0 %v1511_v3  ;;  %v406_v35 = vld [vmem:[%s1685_s13 + $0x118] sm:$0xff] }
  0x86   : > { %639 = vmatprep.subr.mxu1 %v1511_v3  ;;  %480 = vmatpush2.msra.mxu0 %v319_v36  ;;  %v403_v36 = vld [vmem:[%s1685_s13 + $0x100] sm:$0xff] }
  0x87   : > { %640 = vmatpush2.msra.mxu1 %v351_v37  ;;  %481 = vmatprep.subr.mxu0 %v1511_v3  ;;  %v405_v37 = vld [vmem:[%s1685_s13 + $0x110] sm:$0xff] }
  0x88   : > { %641 = vmatprep.subr.mxu1 %v1511_v3  ;;  %482 = vmatpush2.msra.mxu0 %v318_v38  ;;  %v408_v38 = vld [vmem:[%s1685_s13 + $0x128] sm:$0xff] }
  0x89   : > { %642 = vmatpush2.msra.mxu1 %v350_v39  ;;  %483 = vmatprep.subr.mxu0 %v1511_v3  ;;  %v410_v39 = vld [vmem:[%s1685_s13 + $0x138] sm:$0xff] }
  0x8a   : > { %643 = vmatprep.subr.mxu1 %v1511_v3  ;;  %484 = vmatpush2.msra.mxu0 %v317_v40  ;;  %v407_v40 = vld [vmem:[%s1685_s13 + $0x120] sm:$0xff] }
  0x8b   : > { %644 = vmatpush2.msra.mxu1 %v349_v41  ;;  %485 = vmatprep.subr.mxu0 %v1511_v3  ;;  %v409_v41 = vld [vmem:[%s1685_s13 + $0x130] sm:$0xff] }
  0x8c   : > { %645 = vmatprep.subr.mxu1 %v1511_v3  ;;  %486 = vmatpush2.msra.mxu0 %v316_v42  ;;  %v412_v42 = vld [vmem:[%s1685_s13 + $0x148] sm:$0xff] }
  0x8d   : > { %646 = vmatpush2.msra.mxu1 %v348_v43  ;;  %487 = vmatprep.subr.mxu0 %v1511_v3  ;;  %v414_v43 = vld [vmem:[%s1685_s13 + $0x158] sm:$0xff] }
  0x8e   : > { %647 = vmatprep.subr.mxu1 %v1511_v3  ;;  %488 = vmatpush2.msra.mxu0 %v315_v44  ;;  %v411_v44 = vld [vmem:[%s1685_s13 + $0x140] sm:$0xff] }
  0x8f   : > { %648 = vmatpush2.msra.mxu1 %v347_v45  ;;  %489 = vmatprep.subr.mxu0 %v1511_v3  ;;  %v413_v45 = vld [vmem:[%s1685_s13 + $0x150] sm:$0xff] }
  0x90   : > { %649 = vmatprep.subr.mxu1 %v1511_v3  ;;  %490 = vmatpush2.msra.mxu0 %v314_v46  ;;  %v416_v46 = vld [vmem:[%s1685_s13 + $0x168] sm:$0xff] }
  0x91   : > { %650 = vmatpush2.msra.mxu1 %v346_v47  ;;  %491 = vmatprep.subr.mxu0 %v1511_v3  ;;  %v418_v47 = vld [vmem:[%s1685_s13 + $0x178] sm:$0xff] }
  0x92   : > { %651 = vmatprep.subr.mxu1 %v1511_v3  ;;  %492 = vmatpush2.msra.mxu0 %v313_v48  ;;  %v415_v48 = vld [vmem:[%s1685_s13 + $0x160] sm:$0xff] }
  0x93   : > { %652 = vmatpush2.msra.mxu1 %v345_v49  ;;  %493 = vmatprep.subr.mxu0 %v1511_v3  ;;  %v417_v49 = vld [vmem:[%s1685_s13 + $0x170] sm:$0xff] }
  0x94   : > { %653 = vmatprep.subr.mxu1 %v1511_v3  ;;  %494 = vmatpush2.msra.mxu0 %v312_v50  ;;  %v420_v50 = vld [vmem:[%s1685_s13 + $0x188] sm:$0xff] }
  0x95   : > { %654 = vmatpush2.msra.mxu1 %v344_v51  ;;  %495 = vmatprep.subr.mxu0 %v1511_v3  ;;  %v422_v51 = vld [vmem:[%s1685_s13 + $0x198] sm:$0xff] }
  0x96   : > { %655 = vmatprep.subr.mxu1 %v1511_v3  ;;  %496 = vmatpush2.msra.mxu0 %v311_v52  ;;  %v419_v52 = vld [vmem:[%s1685_s13 + $0x180] sm:$0xff] }
  0x97   : > { %656 = vmatpush2.msra.mxu1 %v343_v53  ;;  %497 = vmatprep.subr.mxu0 %v1511_v3  ;;  %v421_v53 = vld [vmem:[%s1685_s13 + $0x190] sm:$0xff] }
  0x98   : > { %657 = vmatprep.subr.mxu1 %v1511_v3  ;;  %498 = vmatpush2.msra.mxu0 %v310_v54  ;;  %v424_v54 = vld [vmem:[%s1685_s13 + $0x1a8] sm:$0xff] }
  0x99   : > { %658 = vmatpush2.msra.mxu1 %v342_v55  ;;  %499 = vmatprep.subr.mxu0 %v1511_v3  ;;  %v426_v55 = vld [vmem:[%s1685_s13 + $0x1b8] sm:$0xff] }
  0x9a   : > { %659 = vmatprep.subr.mxu1 %v1511_v3  ;;  %500 = vmatpush2.msra.mxu0 %v309_v56  ;;  %v423_v56 = vld [vmem:[%s1685_s13 + $0x1a0] sm:$0xff] }
  0x9b   : > { %660 = vmatpush2.msra.mxu1 %v341_v57  ;;  %501 = vmatprep.subr.mxu0 %v1511_v3  ;;  %v425_v57 = vld [vmem:[%s1685_s13 + $0x1b0] sm:$0xff] }
  0x9c   : > { %661 = vmatprep.subr.mxu1 %v1511_v3  ;;  %502 = vmatpush2.msra.mxu0 %v308_v58  ;;  %v428_v58 = vld [vmem:[%s1685_s13 + $0x1c8] sm:$0xff] }
  0x9d   : > { %662 = vmatpush2.msra.mxu1 %v340_v59  ;;  %503 = vmatprep.subr.mxu0 %v1511_v3  ;;  %v430_v59 = vld [vmem:[%s1685_s13 + $0x1d8] sm:$0xff] }
  0x9e   : > { %663 = vmatprep.subr.mxu1 %v1511_v3  ;;  %504 = vmatpush2.msra.mxu0 %v307_v60  ;;  %v427_v60 = vld [vmem:[%s1685_s13 + $0x1c0] sm:$0xff] }
  0x9f   : > { %664 = vmatpush2.msra.mxu1 %v339_v61  ;;  %505 = vmatprep.subr.mxu0 %v1511_v3  ;;  %v429_v61 = vld [vmem:[%s1685_s13 + $0x1d0] sm:$0xff] }
  0xa0   : > { %665 = vmatprep.subr.mxu1 %v1511_v3  ;;  %506 = vmatpush2.msra.mxu0 %v306_v62  ;;  %v432_v62 = vld [vmem:[%s1685_s13 + $0x1e8] sm:$0xff] }
  0xa1   : > { %666 = vmatpush2.msra.mxu1 %v338_v63  ;;  %507 = vmatprep.subr.mxu0 %v1511_v3  ;;  %v434_v63 = vld [vmem:[%s1685_s13 + $0x1f8] sm:$0xff] }
  0xa2   : > { %667 = vmatprep.subr.mxu1 %v1511_v3  ;;  %508 = vmatpush2.msra.mxu0 %v305_v0  ;;  %v431_v0 = vld [vmem:[%s1685_s13 + $0x1e0] sm:$0xff] }
  0xa3   : > { %668 = vmatpush2.msra.mxu1 %v337_v1  ;;  %509 = vmatprep.subr.mxu0 %v1511_v3  ;;  %v433_v1 = vld [vmem:[%s1685_s13 + $0x1f0] sm:$0xff] }
  0xa4   : > { %669 = vmatprep.subr.mxu1 %v1511_v3  ;;  %510 = vmatpush2.msra.mxu0 %v304_v2  ;;  %v379_v3 = vld [vmem:[%s1685_s13 + $0x40] sm:$0xff]  ;;  %v436_v2 = vld [vmem:[%s1685_s13 + $0x208] sm:$0xff] }
  0xa5   : > { %670 = vmatpush2.msra.mxu1 %v336_v4  ;;  %512 = vmatmul.mubr.f32.vlgmr.msra.gmra.mxu0 %v371_v5  ;;  %v438_v4 = vld [vmem:[%s1685_s13 + $0x218] sm:$0xff]  ;;  %v435_v5 = vld [vmem:[%s1685_s13 + $0x200] sm:$0xff] }
  0xa6   : > { %672 = vmatmul.mubr.f32.vlgmr.msra.gmra.mxu1 %v373_v6  ;;  %516 = vmatprep.mubr.f32.mxu0 %v376_v7  ;;  %v437_v6 = vld [vmem:[%s1685_s13 + $0x210] sm:$0xff]  ;;  %v440_v7 = vld [vmem:[%s1685_s13 + $0x228] sm:$0xff] }
  0xa7   : > { %676 = vmatprep.mubr.f32.mxu1 %v378_v8  ;;  %v442_v8 = vld [vmem:[%s1685_s13 + $0x238] sm:$0xff] }
  0xa9   : > { %517 = vmatmul.mubr.f32.gmra.mxu0 %v375_v9  ;;  %v439_v9 = vld [vmem:[%s1685_s13 + $0x220] sm:$0xff] }
  0xaa   : > { %677 = vmatmul.mubr.f32.gmra.mxu1 %v377_v10  ;;  %521 = vmatprep.mubr.f32.mxu0 %v380_v11  ;;  %v441_v10 = vld [vmem:[%s1685_s13 + $0x230] sm:$0xff]  ;;  %v444_v11 = vld [vmem:[%s1685_s13 + $0x248] sm:$0xff] }
  0xab   : > { %681 = vmatprep.mubr.f32.mxu1 %v382_v12  ;;  %v446_v12 = vld [vmem:[%s1685_s13 + $0x258] sm:$0xff] }
  0xad   : > { %522 = vmatmul.mubr.f32.gmra.mxu0 %v379_v3  ;;  %v443_v3 = vld [vmem:[%s1685_s13 + $0x240] sm:$0xff] }
  0xae   : > { %682 = vmatmul.mubr.f32.gmra.mxu1 %v381_v13  ;;  %526 = vmatprep.mubr.f32.mxu0 %v384_v14  ;;  %v445_v13 = vld [vmem:[%s1685_s13 + $0x250] sm:$0xff] }
  0xaf   : > { %686 = vmatprep.mubr.f32.mxu1 %v386_v15  ;;  %v352_v15 = vld [vmem:[#allocation2] sm:$0xff] }
  0xb1   : > { %527 = vmatmul.mubr.f32.gmra.mxu0 %v383_v16 }
  0xb2   : > { %687 = vmatmul.mubr.f32.gmra.mxu1 %v385_v17  ;;  %531 = vmatprep.mubr.f32.mxu0 %v388_v18 }
  0xb3   : > { %691 = vmatprep.mubr.f32.mxu1 %v390_v19 }
  0xb5   : > { %532 = vmatmul.mubr.f32.gmra.mxu0 %v387_v20 }
  0xb6   : > { %692 = vmatmul.mubr.f32.gmra.mxu1 %v389_v21  ;;  %536 = vmatprep.mubr.f32.mxu0 %v392_v22  ;;  %v353_v22 = vld [vmem:[#allocation2 + $0x8] sm:$0xff] }
  0xb7   : > { %696 = vmatprep.mubr.f32.mxu1 %v394_v23 }
  0xb9   : > { %537 = vmatmul.mubr.f32.gmra.mxu0 %v391_v24 }
  0xba   : > { %697 = vmatmul.mubr.f32.gmra.mxu1 %v393_v25  ;;  %541 = vmatprep.mubr.f32.mxu0 %v396_v26 }
  0xbb   : > { %701 = vmatprep.mubr.f32.mxu1 %v398_v27 }
  0xbd   : > { %542 = vmatmul.mubr.f32.gmra.mxu0 %v395_v28 }
  0xbe   : > { %702 = vmatmul.mubr.f32.gmra.mxu1 %v397_v29  ;;  %546 = vmatprep.mubr.f32.mxu0 %v400_v30  ;;  %v354_v29 = vld [vmem:[#allocation2 + $0x10] sm:$0xff] }
  0xbf   : > { %706 = vmatprep.mubr.f32.mxu1 %v402_v31 }
  0xc1   : > { %547 = vmatmul.mubr.f32.gmra.mxu0 %v399_v32 }
  0xc2   : > { %707 = vmatmul.mubr.f32.gmra.mxu1 %v401_v33  ;;  %551 = vmatprep.mubr.f32.mxu0 %v404_v34 }
  0xc3   : > { %711 = vmatprep.mubr.f32.mxu1 %v406_v35 }
  0xc5   : > { %552 = vmatmul.mubr.f32.gmra.mxu0 %v403_v36  ;;  %v355_v36 = vld [vmem:[#allocation2 + $0x18] sm:$0xff] }
  0xc6   : > { %712 = vmatmul.mubr.f32.gmra.mxu1 %v405_v37  ;;  %556 = vmatprep.mubr.f32.mxu0 %v408_v38 }
  0xc7   : > { %716 = vmatprep.mubr.f32.mxu1 %v410_v39 }
  0xc9   : > { %557 = vmatmul.mubr.f32.gmra.mxu0 %v407_v40 }
  0xca   : > { %717 = vmatmul.mubr.f32.gmra.mxu1 %v409_v41  ;;  %561 = vmatprep.mubr.f32.mxu0 %v412_v42 }
  0xcb   : > { %721 = vmatprep.mubr.f32.mxu1 %v414_v43  ;;  %v356_v43 = vld [vmem:[#allocation2 + $0x20] sm:$0xff] }
  0xcd   : > { %562 = vmatmul.mubr.f32.gmra.mxu0 %v411_v44 }
  0xce   : > { %722 = vmatmul.mubr.f32.gmra.mxu1 %v413_v45  ;;  %566 = vmatprep.mubr.f32.mxu0 %v416_v46 }
  0xcf   : > { %726 = vmatprep.mubr.f32.mxu1 %v418_v47 }
  0xd1   : > { %567 = vmatmul.mubr.f32.gmra.mxu0 %v415_v48 }
  0xd2   : > { %727 = vmatmul.mubr.f32.gmra.mxu1 %v417_v49  ;;  %571 = vmatprep.mubr.f32.mxu0 %v420_v50  ;;  %v357_v50 = vld [vmem:[#allocation2 + $0x28] sm:$0xff] }
  0xd3   : > { %731 = vmatprep.mubr.f32.mxu1 %v422_v51 }
  0xd5   : > { %572 = vmatmul.mubr.f32.gmra.mxu0 %v419_v52 }
  0xd6   : > { %732 = vmatmul.mubr.f32.gmra.mxu1 %v421_v53  ;;  %576 = vmatprep.mubr.f32.mxu0 %v424_v54 }
  0xd7   : > { %736 = vmatprep.mubr.f32.mxu1 %v426_v55 }
  0xd9   : > { %577 = vmatmul.mubr.f32.gmra.mxu0 %v423_v56 }
  0xda   : > { %737 = vmatmul.mubr.f32.gmra.mxu1 %v425_v57  ;;  %581 = vmatprep.mubr.f32.mxu0 %v428_v58  ;;  %v358_v57 = vld [vmem:[#allocation2 + $0x30] sm:$0xff] }
  0xdb   : > { %741 = vmatprep.mubr.f32.mxu1 %v430_v59 }
  0xdd   : > { %582 = vmatmul.mubr.f32.gmra.mxu0 %v427_v60 }
  0xde   : > { %742 = vmatmul.mubr.f32.gmra.mxu1 %v429_v61  ;;  %586 = vmatprep.mubr.f32.mxu0 %v432_v62 }
  0xdf   : > { %746 = vmatprep.mubr.f32.mxu1 %v434_v63 }
  0xe1   : > { %587 = vmatmul.mubr.f32.gmra.mxu0 %v431_v0  ;;  %v359_v0 = vld [vmem:[#allocation2 + $0x38] sm:$0xff] }
  0xe2   : > { %747 = vmatmul.mubr.f32.gmra.mxu1 %v433_v1  ;;  %591 = vmatprep.mubr.f32.mxu0 %v436_v2 }
  0xe3   : > { %751 = vmatprep.mubr.f32.mxu1 %v438_v4 }
  0xe5   : > { %592 = vmatmul.mubr.f32.gmra.mxu0 %v435_v5 }
  0xe6   : > { %752 = vmatmul.mubr.f32.gmra.mxu1 %v437_v6  ;;  %596 = vmatprep.mubr.f32.mxu0 %v440_v7 }
  0xe7   : > { %756 = vmatprep.mubr.f32.mxu1 %v442_v8  ;;  %v360_v8 = vld [vmem:[#allocation2 + $0x40] sm:$0xff] }
  0xe9   : > { %597 = vmatmul.mubr.f32.gmra.mxu0 %v439_v9 }
  0xea   : > { %757 = vmatmul.mubr.f32.gmra.mxu1 %v441_v10  ;;  %601 = vmatprep.mubr.f32.mxu0 %v444_v11 }
  0xeb   : > { %761 = vmatprep.mubr.f32.mxu1 %v446_v12 }
  0xed   : > { %602 = vmatmul.mubr.f32.gmra.mxu0 %v443_v3 }
  0xee   : > { %762 = vmatmul.mubr.f32.gmra.mxu1 %v445_v13 }
 0x165   : > { %v513_v14 = vpop.f32.mrf.mxu0 }
 0x166   : > { %v673_v16 = vpop.f32.mrf.mxu1 }
 0x167   : > { %v674_v17 = vadd.f32 %v673_v16, %v513_v14  ;;  %v515_v18 = vpop.f32.mrf.mxu0  ;;  %v361_v14 = vld [vmem:[#allocation2 + $0x48] sm:$0xff] }
 0x168   : > { %v675_v19 = vpop.f32.mrf.mxu1 }
 0x169   : > { %v767_v20 = vadd.f32 %v674_v17, %v352_v15  ;;  %v518_v21 = vpop.f32.mrf.mxu0 }
 0x16a   : > { %v678_v23 = vpop.f32.mrf.mxu1 }
 0x16b   : > { %787 = vst.msk [vmem:[#allocation2] sm:$0xff] %vm786_vm1, %v767_v20  ;;  %v679_v24 = vadd.f32 %v678_v23, %v518_v21  ;;  %v520_v25 = vpop.f32.mrf.mxu0  ;;  %v362_v21 = vld [vmem:[#allocation2 + $0x50] sm:$0xff] }
 0x16c   : > { %v680_v26 = vpop.f32.mrf.mxu1 }
 0x16d   : > { %v768_v27 = vadd.f32 %v679_v24, %v353_v22  ;;  %v523_v28 = vpop.f32.mrf.mxu0 }
 0x16e   : > { %v683_v30 = vpop.f32.mrf.mxu1 }
 0x16f   : > { %788 = vst.msk [vmem:[#allocation2 + $0x8] sm:$0xff] %vm786_vm1, %v768_v27  ;;  %v684_v31 = vadd.f32 %v683_v30, %v523_v28  ;;  %v525_v32 = vpop.f32.mrf.mxu0  ;;  %v363_v28 = vld [vmem:[#allocation2 + $0x58] sm:$0xff] }
 0x170   : > { %v685_v33 = vpop.f32.mrf.mxu1 }
 0x171   : > { %v769_v34 = vadd.f32 %v684_v31, %v354_v29  ;;  %v528_v35 = vpop.f32.mrf.mxu0 }
 0x172   : > { %v688_v37 = vpop.f32.mrf.mxu1 }
 0x173   : > { %789 = vst.msk [vmem:[#allocation2 + $0x10] sm:$0xff] %vm786_vm1, %v769_v34  ;;  %v689_v38 = vadd.f32 %v688_v37, %v528_v35  ;;  %v530_v39 = vpop.f32.mrf.mxu0  ;;  %v364_v35 = vld [vmem:[#allocation2 + $0x60] sm:$0xff] }
 0x174   : > { %v690_v40 = vpop.f32.mrf.mxu1 }
 0x175   : > { %v770_v41 = vadd.f32 %v689_v38, %v355_v36  ;;  %v533_v42 = vpop.f32.mrf.mxu0 }
 0x176   : > { %v693_v44 = vpop.f32.mrf.mxu1 }
 0x177   : > { %790 = vst.msk [vmem:[#allocation2 + $0x18] sm:$0xff] %vm786_vm1, %v770_v41  ;;  %v694_v45 = vadd.f32 %v693_v44, %v533_v42  ;;  %v535_v46 = vpop.f32.mrf.mxu0  ;;  %v365_v42 = vld [vmem:[#allocation2 + $0x68] sm:$0xff] }
 0x178   : > { %v695_v47 = vpop.f32.mrf.mxu1 }
 0x179   : > { %v771_v48 = vadd.f32 %v694_v45, %v356_v43  ;;  %v538_v49 = vpop.f32.mrf.mxu0 }
 0x17a   : > { %v698_v51 = vpop.f32.mrf.mxu1 }
 0x17b   : > { %791 = vst.msk [vmem:[#allocation2 + $0x20] sm:$0xff] %vm786_vm1, %v771_v48  ;;  %v699_v52 = vadd.f32 %v698_v51, %v538_v49  ;;  %v540_v53 = vpop.f32.mrf.mxu0  ;;  %v366_v49 = vld [vmem:[#allocation2 + $0x70] sm:$0xff] }
 0x17c   : > { %v700_v54 = vpop.f32.mrf.mxu1 }
 0x17d   : > { %v772_v55 = vadd.f32 %v699_v52, %v357_v50  ;;  %v543_v56 = vpop.f32.mrf.mxu0 }
 0x17e   : > { %v703_v58 = vpop.f32.mrf.mxu1 }
 0x17f   : > { %792 = vst.msk [vmem:[#allocation2 + $0x28] sm:$0xff] %vm786_vm1, %v772_v55  ;;  %v704_v59 = vadd.f32 %v703_v58, %v543_v56  ;;  %v545_v60 = vpop.f32.mrf.mxu0  ;;  %v367_v56 = vld [vmem:[#allocation2 + $0x78] sm:$0xff] }
 0x180   : > { %v705_v61 = vpop.f32.mrf.mxu1 }
 0x181   : > { %v773_v62 = vadd.f32 %v704_v59, %v358_v57  ;;  %v548_v63 = vpop.f32.mrf.mxu0 }
 0x182   : > { %v708_v1 = vpop.f32.mrf.mxu1 }
 0x183   : > { %793 = vst.msk [vmem:[#allocation2 + $0x30] sm:$0xff] %vm786_vm1, %v773_v62  ;;  %v709_v2 = vadd.f32 %v708_v1, %v548_v63  ;;  %v550_v4 = vpop.f32.mrf.mxu0  ;;  %v368_v63 = vld [vmem:[#allocation2 + $0x80] sm:$0xff] }
 0x184   : > { %v710_v5 = vpop.f32.mrf.mxu1 }
 0x185   : > { %v774_v6 = vadd.f32 %v709_v2, %v359_v0  ;;  %v553_v7 = vpop.f32.mrf.mxu0 }
 0x186   : > { %v713_v9 = vpop.f32.mrf.mxu1 }
 0x187   : > { %794 = vst.msk [vmem:[#allocation2 + $0x38] sm:$0xff] %vm786_vm1, %v774_v6  ;;  %v714_v10 = vadd.f32 %v713_v9, %v553_v7  ;;  %v555_v11 = vpop.f32.mrf.mxu0  ;;  %v369_v7 = vld [vmem:[#allocation2 + $0x88] sm:$0xff] }
 0x188   : > { %v715_v12 = vpop.f32.mrf.mxu1 }
 0x189   : > { %v775_v3 = vadd.f32 %v714_v10, %v360_v8  ;;  %v558_v13 = vpop.f32.mrf.mxu0 }
 0x18a   : > { %v718_v15 = vpop.f32.mrf.mxu1 }
 0x18b   : > { %795 = vst.msk [vmem:[#allocation2 + $0x40] sm:$0xff] %vm786_vm1, %v775_v3  ;;  %v719_v16 = vadd.f32 %v718_v15, %v558_v13  ;;  %v560_v17 = vpop.f32.mrf.mxu0  ;;  %v370_v13 = vld [vmem:[#allocation2 + $0x90] sm:$0xff] }
 0x18c   : > { %v720_v18 = vpop.f32.mrf.mxu1 }
 0x18d   : > { %v776_v19 = vadd.f32 %v719_v16, %v361_v14  ;;  %v563_v20 = vpop.f32.mrf.mxu0 }
 0x18e   : > { %v723_v22 = vpop.f32.mrf.mxu1 }
 0x18f   : > { %796 = vst.msk [vmem:[#allocation2 + $0x48] sm:$0xff] %vm786_vm1, %v776_v19  ;;  %v724_v23 = vadd.f32 %v723_v22, %v563_v20  ;;  %v565_v24 = vpop.f32.mrf.mxu0 }
 0x190   : > { %v725_v25 = vpop.f32.mrf.mxu1 }
 0x191   : > { %v777_v26 = vadd.f32 %v724_v23, %v362_v21  ;;  %v568_v27 = vpop.f32.mrf.mxu0 }
 0x192   : > { %v728_v29 = vpop.f32.mrf.mxu1 }
 0x193   : > { %797 = vst.msk [vmem:[#allocation2 + $0x50] sm:$0xff] %vm786_vm1, %v777_v26  ;;  %v729_v30 = vadd.f32 %v728_v29, %v568_v27  ;;  %v570_v31 = vpop.f32.mrf.mxu0 }
 0x194   : > { %v730_v32 = vpop.f32.mrf.mxu1 }
 0x195   : > { %v778_v33 = vadd.f32 %v729_v30, %v363_v28  ;;  %v573_v34 = vpop.f32.mrf.mxu0 }
 0x196   : > { %v733_v36 = vpop.f32.mrf.mxu1 }
 0x197   : > { %798 = vst.msk [vmem:[#allocation2 + $0x58] sm:$0xff] %vm786_vm1, %v778_v33  ;;  %v734_v37 = vadd.f32 %v733_v36, %v573_v34  ;;  %v575_v38 = vpop.f32.mrf.mxu0 }
 0x198   : > { %v735_v39 = vpop.f32.mrf.mxu1 }
 0x199   : > { %v779_v40 = vadd.f32 %v734_v37, %v364_v35  ;;  %v578_v41 = vpop.f32.mrf.mxu0 }
 0x19a   : > { %v738_v43 = vpop.f32.mrf.mxu1 }
 0x19b   : > { %799 = vst.msk [vmem:[#allocation2 + $0x60] sm:$0xff] %vm786_vm1, %v779_v40  ;;  %v739_v44 = vadd.f32 %v738_v43, %v578_v41  ;;  %v580_v45 = vpop.f32.mrf.mxu0 }
 0x19c   : > { %v740_v46 = vpop.f32.mrf.mxu1 }
 0x19d   : > { %v780_v47 = vadd.f32 %v739_v44, %v365_v42  ;;  %v583_v48 = vpop.f32.mrf.mxu0 }
 0x19e   : > { %v743_v50 = vpop.f32.mrf.mxu1 }
 0x19f   : > { %800 = vst.msk [vmem:[#allocation2 + $0x68] sm:$0xff] %vm786_vm1, %v780_v47  ;;  %v744_v51 = vadd.f32 %v743_v50, %v583_v48  ;;  %v585_v52 = vpop.f32.mrf.mxu0 }
 0x1a0   : > { %v745_v53 = vpop.f32.mrf.mxu1 }
 0x1a1   : > { %v781_v54 = vadd.f32 %v744_v51, %v366_v49  ;;  %v588_v55 = vpop.f32.mrf.mxu0 }
 0x1a2   : > { %v748_v57 = vpop.f32.mrf.mxu1 }
 0x1a3   : > { %801 = vst.msk [vmem:[#allocation2 + $0x70] sm:$0xff] %vm786_vm1, %v781_v54  ;;  %v749_v58 = vadd.f32 %v748_v57, %v588_v55  ;;  %v590_v59 = vpop.f32.mrf.mxu0 }
 0x1a4   : > { %v750_v60 = vpop.f32.mrf.mxu1 }
 0x1a5   : > { %v782_v61 = vadd.f32 %v749_v58, %v367_v56  ;;  %v593_v62 = vpop.f32.mrf.mxu0 }
 0x1a6   : > { %v753_v0 = vpop.f32.mrf.mxu1 }
 0x1a7   : > { %802 = vst.msk [vmem:[#allocation2 + $0x78] sm:$0xff] %vm786_vm1, %v782_v61  ;;  %v754_v1 = vadd.f32 %v753_v0, %v593_v62  ;;  %v595_v2 = vpop.f32.mrf.mxu0 }
 0x1a8   : > { %v755_v4 = vpop.f32.mrf.mxu1 }
 0x1a9   : > { %v783_v5 = vadd.f32 %v754_v1, %v368_v63  ;;  %v598_v6 = vpop.f32.mrf.mxu0 }
 0x1aa   : > { %v758_v8 = vpop.f32.mrf.mxu1 }
 0x1ab   : > { %803 = vst.msk [vmem:[#allocation2 + $0x80] sm:$0xff] %vm786_vm1, %v783_v5  ;;  %v759_v9 = vadd.f32 %v758_v8, %v598_v6  ;;  %v600_v10 = vpop.f32.mrf.mxu0 }
 0x1ac   : > { %v760_v11 = vpop.f32.mrf.mxu1 }
 0x1ad   : > { %v784_v12 = vadd.f32 %v759_v9, %v369_v7  ;;  %v603_v3 = vpop.f32.mrf.mxu0 }
 0x1ae   : > { %v763_v14 = vpop.f32.mrf.mxu1 }
 0x1af   : > { %804 = vst.msk [vmem:[#allocation2 + $0x88] sm:$0xff] %vm786_vm1, %v784_v12  ;;  %v764_v15 = vadd.f32 %v763_v14, %v603_v3  ;;  %v605_v16 = vpop.f32.mrf.mxu0  ;;  %809 = sbr.rel (%p1198_p10) target bundleno = 499 (0x1f3), region = 48 }
 0x1b0   : > { %v765_v17 = vpop.f32.mrf.mxu1 }
 0x1b1   : > { %v785_v18 = vadd.f32 %v764_v15, %v370_v13 }
 0x1b3   : > { %805 = vst.msk [vmem:[#allocation2 + $0x90] sm:$0xff] %vm786_vm1, %v785_v18 }
 0x1b4   : > { %v810_v19 = vld [vmem:[#allocation2] sm:$0xff]  ;;  %v1957_v20 = vld [vmem:[#allocation6] ss:$0 sm:$0xff]  ;;  %v811_v21 = vld [vmem:[#allocation2 + $0x8] sm:$0xff] }
 0x1b5   : > { %v836_v22 = vadd.f32 %v1957_v20, %v810_v19  ;;  %v837_v23 = vadd.f32 %v1957_v20, %v811_v21  ;;  %v812_v24 = vld [vmem:[#allocation2 + $0x10] sm:$0xff]  ;;  %v813_v25 = vld [vmem:[#allocation2 + $0x18] sm:$0xff]  ;;  %v814_v26 = vld [vmem:[#allocation2 + $0x20] sm:$0xff] }
 0x1b6   : > { %v838_v27 = vadd.f32 %v1957_v20, %v812_v24  ;;  %v839_v28 = vadd.f32 %v1957_v20, %v813_v25  ;;  %v840_v29 = vadd.f32 %v1957_v20, %v814_v26  ;;  %v815_v45 = vld [vmem:[#allocation2 + $0x28] sm:$0xff]  ;;  %v816_v50 = vld [vmem:[#allocation2 + $0x30] sm:$0xff]  ;;  %v817_v55 = vld [vmem:[#allocation2 + $0x38] sm:$0xff] }
 0x1b7   : > { %vm855_vm2 = vcmp.ge.f32.partialorder %v836_v22, 0.0  ;;  %v874_v30 = vmul.f32 0.01, %v836_v22  ;;  %vm856_vm3 = vcmp.ge.f32.partialorder %v837_v23, 0.0  ;;  %v875_v31 = vmul.f32 0.01, %v837_v23 }
 0x1b8   : > { %vm857_vm4 = vcmp.ge.f32.partialorder %v838_v27, 0.0  ;;  %v876_v32 = vmul.f32 0.01, %v838_v27  ;;  %vm858_vm5 = vcmp.ge.f32.partialorder %v839_v28, 0.0  ;;  %v877_v33 = vmul.f32 0.01, %v839_v28 }
 0x1b9   : > { %v893_v34 = vsel %vm855_vm2, %v836_v22, %v874_v30  ;;  %v894_v35 = vsel %vm856_vm3, %v837_v23, %v875_v31  ;;  %vm859_vm6 = vcmp.ge.f32.partialorder %v840_v29, 0.0  ;;  %v878_v36 = vmul.f32 0.01, %v840_v29  ;;  %v818_v0 = vld [vmem:[#allocation2 + $0x40] sm:$0xff]  ;;  %v819_v18 = vld [vmem:[#allocation2 + $0x48] sm:$0xff]  ;;  %v820_v19 = vld [vmem:[#allocation2 + $0x50] sm:$0xff] }
 0x1ba   : > { %912 = vst.msk [vmem:[%s1704_s26] sm:$0xff] %vm786_vm1, %v893_v34  ;;  %v931_v37 = vsel %vm786_vm1, %v893_v34, 0.0  ;;  %v974_v38 = vmul.f32 %v893_v34, %v893_v34  ;;  %913 = vst.msk [vmem:[%s1704_s26 + $0x8] sm:$0xff] %vm786_vm1, %v894_v35  ;;  %v932_v39 = vsel %vm786_vm1, %v894_v35, 0.0  ;;  %v975_v40 = vmul.f32 %v894_v35, %v894_v35  ;;  %v821_v21 = vld [vmem:[#allocation2 + $0x58] sm:$0xff]  ;;  %v822_v25 = vld [vmem:[#allocation2 + $0x60] sm:$0xff] }
 0x1bb   : > { %v933_v41 = vadd.f32 %v932_v39, %v931_v37  ;;  %v895_v42 = vsel %vm857_vm4, %v838_v27, %v876_v32  ;;  %v896_v43 = vsel %vm858_vm5, %v839_v28, %v877_v33  ;;  %v897_v44 = vsel %vm859_vm6, %v840_v29, %v878_v36 }
 0x1bc   : > { %v993_v46 = vsel %vm786_vm1, %v974_v38, 0.0  ;;  %v994_v47 = vsel %vm786_vm1, %v975_v40, 0.0  ;;  %914 = vst.msk [vmem:[%s1704_s26 + $0x10] sm:$0xff] %vm786_vm1, %v895_v42  ;;  %v934_v48 = vsel %vm786_vm1, %v895_v42, 0.0  ;;  %v976_v49 = vmul.f32 %v895_v42, %v895_v42  ;;  %915 = vst.msk [vmem:[%s1704_s26 + $0x18] sm:$0xff] %vm786_vm1, %v896_v43 }
 0x1bd   : > { %916 = vst.msk [vmem:[%s1704_s26 + $0x20] sm:$0xff] %vm786_vm1, %v897_v44  ;;  %v995_v51 = vadd.f32 %v994_v47, %v993_v46  ;;  %v935_v52 = vadd.f32 %v934_v48, %v933_v41  ;;  %v936_v53 = vsel %vm786_vm1, %v896_v43, 0.0  ;;  %v977_v54 = vmul.f32 %v896_v43, %v896_v43 }
 0x1be   : > { %v996_v56 = vsel %vm786_vm1, %v976_v49, 0.0  ;;  %v938_v57 = vsel %vm786_vm1, %v897_v44, 0.0  ;;  %v978_v58 = vmul.f32 %v897_v44, %v897_v44  ;;  %v841_v59 = vadd.f32 %v1957_v20, %v815_v45 }
 0x1bf   : > { %v997_v60 = vadd.f32 %v996_v56, %v995_v51  ;;  %v937_v61 = vadd.f32 %v936_v53, %v935_v52  ;;  %v998_v62 = vsel %vm786_vm1, %v977_v54, 0.0  ;;  %v842_v63 = vadd.f32 %v1957_v20, %v816_v50  ;;  %v824_v56 = vld [vmem:[#allocation2 + $0x70] sm:$0xff] }
 0x1c0   : > { %v1000_v1 = vsel %vm786_vm1, %v978_v58, 0.0  ;;  %vm860_vm7 = vcmp.ge.f32.partialorder %v841_v59, 0.0  ;;  %v879_v2 = vmul.f32 0.01, %v841_v59  ;;  %v843_v4 = vadd.f32 %v1957_v20, %v817_v55  ;;  %v823_v55 = vld [vmem:[#allocation2 + $0x68] sm:$0xff] }
 0x1c1   : > { %v999_v5 = vadd.f32 %v998_v62, %v997_v60  ;;  %v939_v6 = vadd.f32 %v938_v57, %v937_v61  ;;  %vm861_vm8 = vcmp.ge.f32.partialorder %v842_v63, 0.0  ;;  %v880_v7 = vmul.f32 0.01, %v842_v63  ;;  %v825_v57 = vld [vmem:[#allocation2 + $0x78] sm:$0xff]  ;;  %v826_v61 = vld [vmem:[#allocation2 + $0x80] sm:$0xff] }
 0x1c2   : > { %v898_v8 = vsel %vm860_vm7, %v841_v59, %v879_v2  ;;  %vm862_vm9 = vcmp.ge.f32.partialorder %v843_v4, 0.0  ;;  %v881_v9 = vmul.f32 0.01, %v843_v4  ;;  %v844_v10 = vadd.f32 %v1957_v20, %v818_v0 }
 0x1c3   : > { %v1001_v11 = vadd.f32 %v1000_v1, %v999_v5  ;;  %917 = vst.msk [vmem:[%s1704_s26 + $0x28] sm:$0xff] %vm786_vm1, %v898_v8  ;;  %v940_v12 = vsel %vm786_vm1, %v898_v8, 0.0  ;;  %v979_v3 = vmul.f32 %v898_v8, %v898_v8  ;;  %v899_v13 = vsel %vm861_vm8, %v842_v63, %v880_v7 }
 0x1c4   : > { %v941_v14 = vadd.f32 %v940_v12, %v939_v6  ;;  %918 = vst.msk [vmem:[%s1704_s26 + $0x30] sm:$0xff] %vm786_vm1, %v899_v13  ;;  %v942_v15 = vsel %vm786_vm1, %v899_v13, 0.0  ;;  %v980_v16 = vmul.f32 %v899_v13, %v899_v13  ;;  %v900_v17 = vsel %vm862_vm9, %v843_v4, %v881_v9 }
 0x1c5   : > { %v1002_v22 = vsel %vm786_vm1, %v979_v3, 0.0  ;;  %919 = vst.msk [vmem:[%s1704_s26 + $0x38] sm:$0xff] %vm786_vm1, %v900_v17  ;;  %v944_v23 = vsel %vm786_vm1, %v900_v17, 0.0  ;;  %v981_v24 = vmul.f32 %v900_v17, %v900_v17  ;;  %vm863_vm10 = vcmp.ge.f32.partialorder %v844_v10, 0.0 }
 0x1c6   : > { %v1003_v26 = vadd.f32 %v1002_v22, %v1001_v11  ;;  %v943_v27 = vadd.f32 %v942_v15, %v941_v14  ;;  %v1004_v28 = vsel %vm786_vm1, %v980_v16, 0.0  ;;  %v882_v29 = vmul.f32 0.01, %v844_v10 }
 0x1c7   : > { %v1006_v30 = vsel %vm786_vm1, %v981_v24, 0.0  ;;  %v845_v31 = vadd.f32 %v1957_v20, %v819_v18  ;;  %v846_v32 = vadd.f32 %v1957_v20, %v820_v19  ;;  %v847_v33 = vadd.f32 %v1957_v20, %v821_v21 }
 0x1c8   : > { %v1005_v34 = vadd.f32 %v1004_v28, %v1003_v26  ;;  %v945_v35 = vadd.f32 %v944_v23, %v943_v27  ;;  %v901_v36 = vsel %vm863_vm10, %v844_v10, %v882_v29  ;;  %v848_v37 = vadd.f32 %v1957_v20, %v822_v25  ;;  %v827_v28 = vld [vmem:[#allocation2 + $0x88] sm:$0xff]  ;;  %v828_v29 = vld [vmem:[#allocation2 + $0x90] sm:$0xff] }
 0x1c9   : > { %920 = vst.msk [vmem:[%s1704_s26 + $0x40] sm:$0xff] %vm786_vm1, %v901_v36  ;;  %v946_v38 = vsel %vm786_vm1, %v901_v36, 0.0  ;;  %v982_v39 = vmul.f32 %v901_v36, %v901_v36  ;;  %vm864_vm11 = vcmp.ge.f32.partialorder %v845_v31, 0.0  ;;  %v883_v40 = vmul.f32 0.01, %v845_v31 }
 0x1ca   : > { %v1007_v41 = vadd.f32 %v1006_v30, %v1005_v34  ;;  %v947_v42 = vadd.f32 %v946_v38, %v945_v35  ;;  %vm865_vm12 = vcmp.ge.f32.partialorder %v846_v32, 0.0  ;;  %v884_v43 = vmul.f32 0.01, %v846_v32 }
 0x1cb   : > { %v1008_v44 = vsel %vm786_vm1, %v982_v39, 0.0  ;;  %v902_v45 = vsel %vm864_vm11, %v845_v31, %v883_v40  ;;  %vm866_vm13 = vcmp.ge.f32.partialorder %v847_v33, 0.0  ;;  %v885_v46 = vmul.f32 0.01, %v847_v33 }
 0x1cc   : > { %v1009_v47 = vadd.f32 %v1008_v44, %v1007_v41  ;;  %921 = vst.msk [vmem:[%s1704_s26 + $0x48] sm:$0xff] %vm786_vm1, %v902_v45  ;;  %v948_v48 = vsel %vm786_vm1, %v902_v45, 0.0  ;;  %v983_v49 = vmul.f32 %v902_v45, %v902_v45  ;;  %v903_v50 = vsel %vm865_vm12, %v846_v32, %v884_v43 }
 0x1cd   : > { %v949_v51 = vadd.f32 %v948_v48, %v947_v42  ;;  %922 = vst.msk [vmem:[%s1704_s26 + $0x50] sm:$0xff] %vm786_vm1, %v903_v50  ;;  %v950_v52 = vsel %vm786_vm1, %v903_v50, 0.0  ;;  %v984_v53 = vmul.f32 %v903_v50, %v903_v50  ;;  %v904_v54 = vsel %vm866_vm13, %v847_v33, %v885_v46 }
 0x1ce   : > { %v1010_v58 = vsel %vm786_vm1, %v983_v49, 0.0  ;;  %923 = vst.msk [vmem:[%s1704_s26 + $0x58] sm:$0xff] %vm786_vm1, %v904_v54  ;;  %v952_v59 = vsel %vm786_vm1, %v904_v54, 0.0  ;;  %v985_v60 = vmul.f32 %v904_v54, %v904_v54  ;;  %vm867_vm14 = vcmp.ge.f32.partialorder %v848_v37, 0.0 }
 0x1cf   : > { %v1011_v62 = vadd.f32 %v1010_v58, %v1009_v47  ;;  %v951_v63 = vadd.f32 %v950_v52, %v949_v51  ;;  %v1012_v0 = vsel %vm786_vm1, %v984_v53, 0.0  ;;  %v886_v1 = vmul.f32 0.01, %v848_v37 }
 0x1d0   : > { %v1014_v2 = vsel %vm786_vm1, %v985_v60, 0.0  ;;  %v849_v4 = vadd.f32 %v1957_v20, %v823_v55  ;;  %v850_v5 = vadd.f32 %v1957_v20, %v824_v56  ;;  %v851_v6 = vadd.f32 %v1957_v20, %v825_v57 }
 0x1d1   : > { %v1013_v7 = vadd.f32 %v1012_v0, %v1011_v62  ;;  %v953_v8 = vadd.f32 %v952_v59, %v951_v63  ;;  %v905_v9 = vsel %vm867_vm14, %v848_v37, %v886_v1  ;;  %v852_v10 = vadd.f32 %v1957_v20, %v826_v61 }
 0x1d2   : > { %924 = vst.msk [vmem:[%s1704_s26 + $0x60] sm:$0xff] %vm786_vm1, %v905_v9  ;;  %v954_v11 = vsel %vm786_vm1, %v905_v9, 0.0  ;;  %v986_v12 = vmul.f32 %v905_v9, %v905_v9  ;;  %vm868_vm15 = vcmp.ge.f32.partialorder %v849_v4, 0.0  ;;  %v887_v3 = vmul.f32 0.01, %v849_v4 }
 0x1d3   : > { %v1015_v13 = vadd.f32 %v1014_v2, %v1013_v7  ;;  %v955_v14 = vadd.f32 %v954_v11, %v953_v8  ;;  %vm869_vm0 = vcmp.ge.f32.partialorder %v850_v5, 0.0  ;;  %v888_v15 = vmul.f32 0.01, %v850_v5 }
 0x1d4   : > { %v1016_v16 = vsel %vm786_vm1, %v986_v12, 0.0  ;;  %v906_v17 = vsel %vm868_vm15, %v849_v4, %v887_v3  ;;  %vm870_vm2 = vcmp.ge.f32.partialorder %v851_v6, 0.0  ;;  %v889_v18 = vmul.f32 0.01, %v851_v6 }
 0x1d5   : > { %v1017_v19 = vadd.f32 %v1016_v16, %v1015_v13  ;;  %925 = vst.msk [vmem:[%s1704_s26 + $0x68] sm:$0xff] %vm786_vm1, %v906_v17  ;;  %v956_v21 = vsel %vm786_vm1, %v906_v17, 0.0  ;;  %v987_v22 = vmul.f32 %v906_v17, %v906_v17  ;;  %v907_v23 = vsel %vm869_vm0, %v850_v5, %v888_v15 }
 0x1d6   : > { %v957_v24 = vadd.f32 %v956_v21, %v955_v14  ;;  %926 = vst.msk [vmem:[%s1704_s26 + $0x70] sm:$0xff] %vm786_vm1, %v907_v23  ;;  %v958_v25 = vsel %vm786_vm1, %v907_v23, 0.0  ;;  %v988_v26 = vmul.f32 %v907_v23, %v907_v23  ;;  %v908_v27 = vsel %vm870_vm2, %v851_v6, %v889_v18 }
 0x1d7   : > { %v1018_v30 = vsel %vm786_vm1, %v987_v22, 0.0  ;;  %927 = vst.msk [vmem:[%s1704_s26 + $0x78] sm:$0xff] %vm786_vm1, %v908_v27  ;;  %v960_v31 = vsel %vm786_vm1, %v908_v27, 0.0  ;;  %v989_v32 = vmul.f32 %v908_v27, %v908_v27  ;;  %vm871_vm3 = vcmp.ge.f32.partialorder %v852_v10, 0.0 }
 0x1d8   : > { %v1019_v33 = vadd.f32 %v1018_v30, %v1017_v19  ;;  %v959_v34 = vadd.f32 %v958_v25, %v957_v24  ;;  %v1020_v35 = vsel %vm786_vm1, %v988_v26, 0.0  ;;  %v890_v36 = vmul.f32 0.01, %v852_v10 }
 0x1d9   : > { %v1022_v37 = vsel %vm786_vm1, %v989_v32, 0.0  ;;  %v853_v38 = vadd.f32 %v1957_v20, %v827_v28  ;;  %v854_v39 = vadd.f32 %v1957_v20, %v828_v29  ;;  %vm1036_vm6 = vcmask 1040384  }
 0x1da   : > { %v1021_v40 = vadd.f32 %v1020_v35, %v1019_v33  ;;  %v961_v41 = vadd.f32 %v960_v31, %v959_v34  ;;  %v909_v42 = vsel %vm871_vm3, %v852_v10, %v890_v36  ;;  %vm1038_vm7 = vcmask 189440  }
 0x1db   : > { %928 = vst.msk [vmem:[%s1704_s26 + $0x80] sm:$0xff] %vm786_vm1, %v909_v42  ;;  %v962_v43 = vsel %vm786_vm1, %v909_v42, 0.0  ;;  %v990_v44 = vmul.f32 %v909_v42, %v909_v42  ;;  %vm872_vm4 = vcmp.ge.f32.partialorder %v853_v38, 0.0  ;;  %v891_v45 = vmul.f32 0.01, %v853_v38 }
 0x1dc   : > { %v1023_v46 = vadd.f32 %v1022_v37, %v1021_v40  ;;  %v963_v47 = vadd.f32 %v962_v43, %v961_v41  ;;  %vm873_vm5 = vcmp.ge.f32.partialorder %v854_v39, 0.0  ;;  %v892_v48 = vmul.f32 0.01, %v854_v39 }
 0x1dd   : > { %v1024_v49 = vsel %vm786_vm1, %v990_v44, 0.0  ;;  %v910_v50 = vsel %vm872_vm4, %v853_v38, %v891_v45 }
 0x1de   : > { %v1025_v20 = vadd.f32 %v1024_v49, %v1023_v46  ;;  %929 = vst.msk [vmem:[%s1704_s26 + $0x88] sm:$0xff] %vm786_vm1, %v910_v50  ;;  %v964_v51 = vsel %vm786_vm1, %v910_v50, 0.0  ;;  %v991_v52 = vmul.f32 %v910_v50, %v910_v50  ;;  %v911_v53 = vsel %vm873_vm5, %v854_v39, %v892_v48 }
 0x1df   : > { %v965_v54 = vadd.f32 %v964_v51, %v963_v47  ;;  %930 = vst.msk [vmem:[%s1704_s26 + $0x90] sm:$0xff] %vm786_vm1, %v911_v53  ;;  %v966_v55 = vsel %vm786_vm1, %v911_v53, 0.0  ;;  %v992_v56 = vmul.f32 %v911_v53, %v911_v53 }
 0x1e0   : > { %v1026_v57 = vsel %vm786_vm1, %v991_v52, 0.0 }
 0x1e1   : > { %v1027_v58 = vadd.f32 %v1026_v57, %v1025_v20  ;;  %v967_v59 = vadd.f32 %v966_v55, %v965_v54  ;;  %v1028_v60 = vsel %vm786_vm1, %v992_v56, 0.0 }
 0x1e3   : > { %v968_v61 = vrot.slane %v967_v59, 4  ;;  %v1029_v62 = vadd.f32 %v1028_v60, %v1027_v58 }
 0x1e5   : > { %v969_v63 = vadd.f32 %v968_v61, %v967_v59  ;;  %v1030_v0 = vrot.slane %v1029_v62, 4 }
 0x1e7   : > { %v1031_v1 = vadd.f32 %v1030_v0, %v1029_v62  ;;  %v970_v2 = vrot.slane %v969_v63, 2 }
 0x1e9   : > { %v971_v4 = vadd.f32 %v970_v2, %v969_v63  ;;  %v1032_v5 = vrot.slane %v1031_v1, 2 }
 0x1eb   : > { %v972_v6 = vrot.slane %v971_v4, 1  ;;  %v1033_v7 = vadd.f32 %v1032_v5, %v1031_v1 }
 0x1ed   : > { %v973_v8 = vadd.f32 %v972_v6, %v971_v4  ;;  %v1034_v9 = vrot.slane %v1033_v7, 1 }
 0x1ef   : > { %v1035_v10 = vadd.f32 %v1034_v9, %v1033_v7 }
 0x1f1   : > { %v1037_v11 = vsel %vm1036_vm6, %v973_v8, %v1035_v10 }
 0x1f2   : > { %1039 = vst.msk [vmem:[%s253_s30] sm:$0x3] %vm1038_vm7, %v1037_v11 }
 0x1f3 PF: > { %s2150_s21 = sld [smem:[#allocation15_spill]]  ;;  %s1201_s4 = sshll.u32 %s1491_s22, 5 }
 0x1f4   : > { %s2151_s10 = sld [smem:[#allocation19_spill]]  ;;  %s1063_s13 = sshll.u32 %s253_s30, 4  ;;  %s1064_s13 = int_to_ptr.vmem [resolvable:$true] %s1063_s13 }
 0x1f5   : > { %s1046_s28 = scalar_lea.sflag [#allocation5], %s251_s25  ;;  %s1379_s12 = scalar_lea.vmem %s1064_s13, 32 }
 0x1f6   : > { %p1380_p12 = scmp.ne.s32.totalorder %s1064_s13, %s1379_s12  ;;  %s1512_s6 = smov [#allocation8]  }
 0x1f7   : > { %s1383_s18 = sshll.u32 %s1512_s6, 4  ;;  %s1384_s18 = int_to_ptr.vmem [resolvable:$false] %s1383_s18 }
 0x1f8   : > { %s1385_s26 = scalar_lea.vmem %s1384_s18, 64  ;;  %p1386_p5 = scmp.lt.s32.totalorder %s1064_s13, %s1384_s18 }
 0x1f9   : > { %p2152_p0 = scmp.ne.s32.totalorder %s2150_s21, 0  ;;  %p1387_p8 = scmp.lt.s32.totalorder %s1385_s26, %s1379_s12 }
 0x1fa   : > { %s1061_s14 = scalar_lea.hbm %s2151_s10, %s1201_s4 }
 0x1fb   : > { %p1381_p1 = pnand %p1380_p12, %p2152_p0  ;;  %p1388_p9 = por %p1387_p8, %p1386_p5 }
 0x1fd   : > { %p1382_p2 = pneg %p1381_p1 }
 0x1ff   : > { %p1389_p11 = pnand %p1388_p9, %p1382_p2 }
 0x201   : > { %1392 = shalt.err (!%p1389_p11)
}
 0x202   : > { %s1393_s22 = scalar_lea.hbm %s1061_s14, 32  ;;  %s1397_s30 = scalar_lea.hbm %s2151_s10, 64 }
 0x203   : > { %p1394_p13 = scmp.ne.s32.totalorder %s1061_s14, %s1393_s22  ;;  %p1398_p7 = scmp.lt.s32.totalorder %s1061_s14, %s2151_s10 }
 0x204   : > { %p1399_p3 = scmp.lt.s32.totalorder %s1397_s30, %s1393_s22 }
 0x205   : > { %p1395_p4 = pnand %p1394_p13, %p2152_p0 }
 0x206   : > { %p1400_p10 = por %p1399_p3, %p1398_p7 }
 0x207   : > { %p1396_p6 = pneg %p1395_p4 }
 0x209   : > { %p1401_p12 = pnand %p1400_p10, %p1396_p6 }
 0x20b   : > { %1404 = shalt.err (!%p1401_p12)
}
 0x20c   : > { %1213 = dma.vmem_to_hbm [thread:$0]  (%p2152_p0), %s1064_s13, 32, %s1061_s14, %s1046_s28  }
 0x20d PF: > { %s2153_s15 = sld [smem:[#allocation14_spill]] }
 0x20e   : > { %s2154_s23 = sld [smem:[#allocation12_spill]] }
 0x20f   : > { %s2155_s4 = sld [smem:[#allocation16_spill]] }
 0x213   : > { %p1230_p1 = scmp.ge.s32.totalorder %s2153_s15, 2 }
 0x214   : > { %s1083_s8 = sand.u32 1, %s2154_s23  }
 0x215   : > { %p2156_p2 = scmp.ne.s32.totalorder %s2155_s4, 0  ;;  %s1084_s27 = scalar_lea.sflag [#allocation5], %s1083_s8 }
 0x217   : > { %p1224_p5 = pnand %p1230_p1, %p2156_p2 }
 0x219   : > { %p1225_p8 = pneg %p1224_p5 }
 0x21b   : > { %1458 = dma.done.wait (%p1225_p8), %s1084_s27, 32  }
 0x21c   : > { %1460 = vsyncadd (%p1225_p8), %s1084_s27, 4294967264  ;;  %s22_s25 = sadd.s32 1, %s2153_s15   ;;  %s2157_s21 = sld [smem:[#allocation13_spill]] }
 0x21d   : > { %p19_p9 = scmp.ge.s32.totalorder %s22_s25, 6   ;;  %s2158_s23 = sld [smem:[#allocation17_spill]] }
 0x21e   : > { %s2159_s15 = smov %s1467_s16  ;;  %s2160_s16 = smov %s1471_s17 }
 0x21f   : > { %s2161_s17 = smov %s1667_s11  ;;  %s2162_s18 = smov %s1479_s19 }
 0x220   : > { %s2163_s19 = smov %s1483_s20  ;;  %s2164_s20 = smov %s1672_s7 }
 0x221   : > { %s2165_s22 = smov %s1499_s24  ;;  %s2166_s24 = smov %s2172_s5 }
 0x222   :  { %21 = sbr.rel (!%p19_p9) target bundleno = 13 (0xd), region = 102 }
 0x227   :  { %1089 = vsyncpa [#allocation4], 1 }
 0x228   :  { %1091 = vsyncpa [#allocation4 + $0x1], 1 }
 0x229   :  { %1092 = vsyncpa [#allocation7], 1 }
 0x22a   :  { %1093 = vsyncpa [#allocation5], 1 }
 0x22b   :  { %1095 = vsyncpa [#allocation5 + $0x1], 1 }

</bundles_post_ra>
